<compile_context>
chip_gen: v7x
topology: tpu7x:2x2x1
jax: 0.10.0
libtpu: 0.0.40
codegen_flags: <defaults>
</compile_context>

<pallas_src>
import functools
import math

import jax
import jax.numpy as jnp
from jax.experimental import pallas as pl
from jax.experimental.pallas import tpu as pltpu

LANE = 128
_MIB = 1024 * 1024


# --------------------------------------------------------------------------- #
# kernel 1: BN + fused QKV projection + head-major relayout (one shot)
# --------------------------------------------------------------------------- #
def _precompute_kernel(x_ref, bn_w_ref, bn_b_ref,
                       wq_ref, bq_ref, wk_ref, bk_ref, wv_ref, bv_ref,
                       xn_ref, q_ref, k_ref, v_ref, *, num_heads):
    n, e = x_ref.shape
    dh = e // num_heads

    x = x_ref[...]
    mu = jnp.mean(x, axis=0, keepdims=True)
    var = jnp.mean((x - mu) ** 2, axis=0, keepdims=True)          # biased (training-mode BN)
    xn = (x - mu) * jax.lax.rsqrt(var + 1e-5) * bn_w_ref[...] + bn_b_ref[...]
    xn_bf = xn.astype(jnp.bfloat16)
    xn_ref[...] = xn_bf

    # Wq / bq are pre-scaled by 1/sqrt(Dh) host-side.
    q = jnp.dot(xn_bf, wq_ref[...], preferred_element_type=jnp.float32) + bq_ref[...]
    k = jnp.dot(xn_bf, wk_ref[...], preferred_element_type=jnp.float32) + bk_ref[...]
    v = jnp.dot(xn_bf, wv_ref[...], preferred_element_type=jnp.float32) + bv_ref[...]

    # One-time head relayouts (XLU); every query tile then reuses these without transposes.
    q_ref[...] = jnp.transpose(q.reshape(n, num_heads, dh), (1, 0, 2)).astype(jnp.bfloat16)
    v_ref[...] = jnp.transpose(v.reshape(n, num_heads, dh), (1, 0, 2)).astype(jnp.bfloat16)
    # K head-major with N minor: a single 2-D transpose then a major-dim split (no extra move).
    k_ref[...] = k.T.reshape(num_heads, dh, n).astype(jnp.bfloat16)


# --------------------------------------------------------------------------- #
# kernel 2: per-row-tile attention + residual + padded MLP chain
# --------------------------------------------------------------------------- #
def _tile_kernel(xn_ref, q_ref, k_ref, v_ref,
                 wo_ref, bo_ref,
                 w1_ref, b1_ref, w2_ref, b2_ref, w4_ref, b4_ref,
                 w5_ref, b5_ref, w6_ref, b6_ref, w3_ref, b3_ref,
                 o_ref):
    q = q_ref[...]                                                 # (H, tN, Dh) bf16, pre-scaled
    # Scores against head-major K (H, Dh, N): plain per-head matmul, no per-tile K relayout.
    s = jnp.einsum('hqd,hdk->hqk', q, k_ref[...],
                   preferred_element_type=jnp.float32)             # (H, tN, N) f32
    s = s - jnp.max(s, axis=-1, keepdims=True)
    # f32 exp keeps v5e happy.  TODO(synk): gate a bf16 exp on v6e/v7x for EUP throughput.
    p = jnp.exp(s)
    # approx reciprocal (~1e-3 rel err) is fine at this model's tolerance.
    p = p * pl.reciprocal(jnp.sum(p, axis=-1, keepdims=True), approx=True)

    ctx = jnp.einsum('hqk,hkd->hqd', p.astype(jnp.bfloat16), v_ref[...],
                     preferred_element_type=jnp.float32)           # (H, tN, Dh) f32
    tn = ctx.shape[1]
    e = ctx.shape[0] * ctx.shape[2]
    ctx = jnp.transpose(ctx, (1, 0, 2)).reshape(tn, e)             # the single per-tile relayout
    attn = jnp.dot(ctx.astype(jnp.bfloat16), wo_ref[...],
                   preferred_element_type=jnp.float32) + bo_ref[...]

    y = xn_ref[...].astype(jnp.float32) + attn                     # residual in f32

    def dense(t, w_ref, b_ref, relu=True):
        z = jnp.dot(t.astype(jnp.bfloat16), w_ref[...],
                    preferred_element_type=jnp.float32) + b_ref[...]
        return jnp.maximum(z, 0.0) if relu else z

    y = dense(y, w1_ref, b1_ref)          # num_i       -> pad(num_h)
    y = dense(y, w2_ref, b2_ref)          # pad(num_h)  -> pad(2*num_h)
    y = dense(y, w4_ref, b4_ref)          # pad(2num_h) -> pad(4*num_h)
    y = dense(y, w5_ref, b5_ref)          # pad(4num_h) -> pad(2*num_h)
    y = dense(y, w6_ref, b6_ref)          # pad(2num_h) -> pad(num_h)
    y = dense(y, w3_ref, b3_ref, relu=False)                       # (tN, num_o_pad)

    # per-tile partial sum over rows, lane-dense 128-wide store
    o_ref[...] = jnp.sum(y, axis=0, keepdims=True)


# --------------------------------------------------------------------------- #
# wrapper helpers
# --------------------------------------------------------------------------- #
def _rup(v, m):
    return ((v + m - 1) // m) * m


def _pick_row_tile(n, num_heads, target=512, score_budget_bytes=8 * _MIB):
    """Largest row tile (pref. multiple of 16) dividing n, with the (H, tile_n, N) score
    tensor bounded by score_budget_bytes (f32 scores + bf16 probs ~= 6 bytes/elem)."""
    cap = score_budget_bytes // max(1, 6 * num_heads * n)
    cap16 = (cap // 16) * 16
    target = max(16, min(target, cap16 if cap16 >= 16 else 16))
    if n <= target:
        return n
    for step in (16, 8):
        t = (target // step) * step
        while t >= step:
            if n % t == 0:
                return t
            t -= step
    return n


def _padded_nbytes(shape, dtype):
    """VMEM bytes for an array including (sublane, lane) tile padding."""
    item = jnp.dtype(dtype).itemsize
    s = list(shape) if len(shape) else [1]
    s[-1] = _rup(s[-1], LANE)
    if len(s) >= 2:
        s[-2] = _rup(s[-2], 8 * max(1, 4 // item))
    total = 1
    for d in s:
        total *= d
    return total * item


def _vmem_capacity_bytes():
    try:
        return int(pltpu.get_tpu_info().vmem_capacity_bytes)
    except Exception:
        return 64 * _MIB            # conservative (v7x-sized) fallback


# --------------------------------------------------------------------------- #
# forward wrapper
# --------------------------------------------------------------------------- #
def mlp_self_forward(x, params, num_heads, row_tile=None):
    x = jnp.asarray(x, jnp.float32)
    N, E = x.shape
    assert E % num_heads == 0
    Dh = E // num_heads
    scale = 1.0 / math.sqrt(Dh)

    num_h = params["w1"].shape[0]
    num_o = params["w3"].shape[0]
    H1p, H2p, H4p = _rup(num_h, LANE), _rup(2 * num_h, LANE), _rup(4 * num_h, LANE)
    num_o_pad = _rup(num_o, LANE)

    def wt(w, rows_to=None, cols_to=None, s=None):
        """Pre-transposed (optionally scaled) bf16 weight, zero-padded to (rows_to, cols_to)."""
        w = jnp.asarray(w, jnp.float32).T
        if s is not None:
            w = w * s
        r, c = w.shape
        rows_to = r if rows_to is None else rows_to
        cols_to = c if cols_to is None else cols_to
        return jnp.zeros((rows_to, cols_to), jnp.float32).at[:r, :c].set(w).astype(jnp.bfloat16)

    def row(b, to=None, s=None):
        b = jnp.asarray(b, jnp.float32).reshape(1, -1)
        if s is not None:
            b = b * s
        to = b.shape[1] if to is None else to
        return jnp.zeros((1, to), jnp.float32).at[:, : b.shape[1]].set(b)

    in_w = jnp.asarray(params["in_proj_w"], jnp.float32)
    in_b = jnp.asarray(params["in_proj_b"], jnp.float32).reshape(-1)
    # fold the softmax scale into Wq / bq host-side
    wq_t, bq = wt(in_w[:E], s=scale), row(in_b[:E], s=scale)
    wk_t, bk = wt(in_w[E:2 * E]), row(in_b[E:2 * E])
    wv_t, bv = wt(in_w[2 * E:]), row(in_b[2 * E:])
    wo_t, bo = wt(params["out_proj_w"]), row(params["out_proj_b"])

    # MLP hidden widths zero-padded to lane-dense multiples of 128 (exact math).
    w1_t, b1 = wt(params["w1"], cols_to=H1p), row(params["b1"], H1p)
    w2_t, b2 = wt(params["w2"], rows_to=H1p, cols_to=H2p), row(params["b2"], H2p)
    w4_t, b4 = wt(params["w4"], rows_to=H2p, cols_to=H4p), row(params["b4"], H4p)
    w5_t, b5 = wt(params["w5"], rows_to=H4p, cols_to=H2p), row(params["b5"], H2p)
    w6_t, b6 = wt(params["w6"], rows_to=H2p, cols_to=H1p), row(params["b6"], H1p)
    w3_t, b3 = wt(params["w3"], rows_to=H1p, cols_to=num_o_pad), row(params["b3"], num_o_pad)
    # TODO(synk): num_i / per-head Dh are left unpadded; padding E per head to 128 would
    # further improve MXU lane occupancy of the attention matmuls.

    bn_w, bn_b = row(params["bn_w"]), row(params["bn_b"])

    tile_n = _pick_row_tile(N, num_heads) if row_tile is None else int(row_tile)
    assert N % tile_n == 0, f"row tile {tile_n} must divide N={N}"
    n_tiles = N // tile_n

    vmem_cap = _vmem_capacity_bytes()

    # ---- kernel 1: BN + fused QKV projection (single shot, whole arrays in VMEM) ----
    pre_out_shapes = (
        jax.ShapeDtypeStruct((N, E), jnp.bfloat16),                 # xn
        jax.ShapeDtypeStruct((num_heads, N, Dh), jnp.bfloat16),     # Q head-major
        jax.ShapeDtypeStruct((num_heads, Dh, N), jnp.bfloat16),     # K head-major, N minor
        jax.ShapeDtypeStruct((num_heads, N, Dh), jnp.bfloat16),     # V head-major
    )
    pre_args = (x, bn_w, bn_b, wq_t, bq, wk_t, bk, wv_t, bv)
    pre_bytes = (sum(_padded_nbytes(a.shape, a.dtype) for a in pre_args)
                 + sum(_padded_nbytes(s.shape, s.dtype) for s in pre_out_shapes))
    pre_limit = int(min(max(4 * pre_bytes + 16 * _MIB, 32 * _MIB), vmem_cap - 4 * _MIB))

    xn, q_hm, k_hm, v_hm = pl.pallas_call(
        functools.partial(_precompute_kernel, num_heads=num_heads),
        out_shape=pre_out_shapes,
        compiler_params=pltpu.CompilerParams(vmem_limit_bytes=pre_limit),
    )(*pre_args)

    # ---- kernel 2: row-tiled attention + MLP, fully parallel grid ----
    main_args = (xn, q_hm, k_hm, v_hm, wo_t, bo,
                 w1_t, b1, w2_t, b2, w4_t, b4, w5_t, b5, w6_t, b6, w3_t, b3)
    n_blocked = 2        # xn and Q are pipeline-tiled; everything else stays resident

    def build_and_run(single_buffer_residents):
        def resident(a):
            zeros = (0,) * a.ndim
            kwargs = dict(pipeline_mode=pl.Buffered(1)) if single_buffer_residents else {}
            return pl.BlockSpec(a.shape, lambda i, _z=zeros: _z, **kwargs)

        in_specs = [
            pl.BlockSpec((tile_n, E), lambda i: (i, 0)),                  # xn tile
            pl.BlockSpec((num_heads, tile_n, Dh), lambda i: (0, i, 0)),   # Q tile
        ] + [resident(a) for a in main_args[n_blocked:]]

        buf = 1 if single_buffer_residents else 2
        resident_bytes = buf * sum(_padded_nbytes(a.shape, a.dtype)
                                   for a in main_args[n_blocked:])
        blocked_bytes = 2 * (_padded_nbytes((tile_n, E), jnp.bfloat16)
                             + _padded_nbytes((num_heads, tile_n, Dh), jnp.bfloat16))
        out_bytes = 2 * _padded_nbytes((1, num_o_pad), jnp.float32)
        temp_bytes = (num_heads * tile_n * _rup(N, LANE) * 6        # f32 scores + bf16 probs
                      + 4 * tile_n * max(E, H4p, num_o_pad) * 4)    # MLP activations
        limit = int(min(max(resident_bytes + blocked_bytes + out_bytes + temp_bytes + 16 * _MIB,
                            32 * _MIB),
                        vmem_cap - 4 * _MIB))

        return pl.pallas_call(
            _tile_kernel,
            out_shape=jax.ShapeDtypeStruct((n_tiles, num_o_pad), jnp.float32),
            grid=(n_tiles,),
            in_specs=in_specs,
            out_specs=pl.BlockSpec((1, num_o_pad), lambda i: (i, 0)),
            compiler_params=pltpu.CompilerParams(
                # independent tiles + per-tile output rows -> both TensorCores usable on v7x
                dimension_semantics=("parallel",),
                vmem_limit_bytes=limit,
            ),
        )(*main_args)

    try:
        partials = jax.block_until_ready(build_and_run(True))
    except Exception:
        # pipeline_mode=pl.Buffered(1) unsupported on this jax version: fall back to the
        # default double-buffered residents (correct, just 2x resident VMEM).
        partials = jax.block_until_ready(build_and_run(False))

    out = jnp.sum(partials, axis=0) * (1.0 / N)      # mean over dim 0
    return out[:num_o]


# --------------------------------------------------------------------------- #
# pure-JAX reference (f32) for a tolerance check
# --------------------------------------------------------------------------- #
def mlp_self_reference(x, params, num_heads):
    x = x.astype(jnp.float32)
    N, E = x.shape
    Dh = E // num_heads
    mu = x.mean(0, keepdims=True)
    var = ((x - mu) ** 2).mean(0, keepdims=True)
    xn = (x - mu) / jnp.sqrt(var + 1e-5) * params["bn_w"] + params["bn_b"]

    qkv = xn @ params["in_proj_w"].T + params["in_proj_b"]
    q, k, v = qkv[:, :E], qkv[:, E:2 * E], qkv[:, 2 * E:]
    q = q.reshape(N, num_heads, Dh).transpose(1, 0, 2)
    k = k.reshape(N, num_heads, Dh).transpose(1, 0, 2)
    v = v.reshape(N, num_heads, Dh).transpose(1, 0, 2)
    s = jnp.einsum('hqd,hkd->hqk', q, k) / math.sqrt(Dh)
    p = jax.nn.softmax(s, axis=-1)
    ctx = jnp.einsum('hqk,hkd->hqd', p, v).transpose(1, 0, 2).reshape(N, E)
    attn = ctx @ params["out_proj_w"].T + params["out_proj_b"]

    y = xn + attn
    for w, b in (("w1", "b1"), ("w2", "b2"), ("w4", "b4"), ("w5", "b5"), ("w6", "b6")):
        y = jnp.maximum(y @ params[w].T + params[b], 0.0)
    y = y @ params["w3"].T + params["b3"]
    return y.mean(0)


# --------------------------------------------------------------------------- #
# deterministic parameter construction (matches the module's init scheme)
# --------------------------------------------------------------------------- #
def _kaiming_normal(key, out_dim, in_dim):
    std = math.sqrt(2.0 / in_dim)
    return std * jax.random.normal(key, (out_dim, in_dim), jnp.float32)


def _xavier_uniform(key, out_dim, in_dim):
    limit = math.sqrt(6.0 / (in_dim + out_dim))
    return jax.random.uniform(key, (out_dim, in_dim), jnp.float32, -limit, limit)


def make_params(key, num_i, num_h, num_o):
    ks = jax.random.split(key, 8)
    zrow = lambda d: jnp.zeros((1, d), jnp.float32)
    return {
        "bn_w": jnp.ones((1, num_i), jnp.float32), "bn_b": zrow(num_i),
        "in_proj_w": _xavier_uniform(ks[0], 3 * num_i, num_i), "in_proj_b": zrow(3 * num_i),
        "out_proj_w": _xavier_uniform(ks[1], num_i, num_i),    "out_proj_b": zrow(num_i),
        "w1": _kaiming_normal(ks[2], num_h, num_i),            "b1": zrow(num_h),
        "w2": _kaiming_normal(ks[3], 2 * num_h, num_h),        "b2": zrow(2 * num_h),
        "w4": _kaiming_normal(ks[4], 4 * num_h, 2 * num_h),    "b4": zrow(4 * num_h),
        "w5": _kaiming_normal(ks[5], 2 * num_h, 4 * num_h),    "b5": zrow(2 * num_h),
        "w6": _kaiming_normal(ks[6], num_h, 2 * num_h),        "b6": zrow(num_h),
        "w3": _xavier_uniform(ks[7], num_o, num_h),            "b3": zrow(num_o),
    }


if __name__ == "__main__":
    N, num_i, num_h, num_o, num_heads = 64, 32, 32, 16, 4
    key = jax.random.PRNGKey(0)
    k_x, k_p = jax.random.split(key)
    x = jax.random.normal(k_x, (N, num_i), jnp.float32)
    params = make_params(k_p, num_i, num_h, num_o)

    ref = mlp_self_reference(x, params, num_heads)

    # Exercise both the single-tile path (auto tile) and the multi-tile parallel path.
    for rt in (None, 16):
        out = jax.block_until_ready(mlp_self_forward(x, params, num_heads, row_tile=rt))
        assert out.shape == (num_o,), out.shape
        assert bool(jnp.all(jnp.isfinite(out)))
        assert bool(jnp.allclose(out, ref, rtol=1e-1, atol=1e-1)), \
            (rt, jnp.max(jnp.abs(out - ref)), out, ref)
    print("KERNEL_OK")
</pallas_src>

<mosaic_0001>
module attributes {stable_mosaic.version = 11 : i64} {
  func.func @_precompute_kernel(%arg0: memref<64x32xf32, #tpu.memory_space<vmem>>, %arg1: memref<1x32xf32, #tpu.memory_space<vmem>>, %arg2: memref<1x32xf32, #tpu.memory_space<vmem>>, %arg3: memref<32x32xbf16, #tpu.memory_space<vmem>>, %arg4: memref<1x32xf32, #tpu.memory_space<vmem>>, %arg5: memref<32x32xbf16, #tpu.memory_space<vmem>>, %arg6: memref<1x32xf32, #tpu.memory_space<vmem>>, %arg7: memref<32x32xbf16, #tpu.memory_space<vmem>>, %arg8: memref<1x32xf32, #tpu.memory_space<vmem>>, %arg9: memref<64x32xbf16, #tpu.memory_space<vmem>>, %arg10: memref<4x64x8xbf16, #tpu.memory_space<vmem>>, %arg11: memref<4x8x64xbf16, #tpu.memory_space<vmem>>, %arg12: memref<4x64x8xbf16, #tpu.memory_space<vmem>>) attributes {dimension_semantics = [], scalar_prefetch = 0 : i64, scratch_operands = 0 : i64, tpu.core_type = #tpu.core_type<tc>} {
    %c0 = arith.constant 0 : index
    %c0_0 = arith.constant 0 : index
    %0 = vector.load %arg0[%c0, %c0_0] : memref<64x32xf32, #tpu.memory_space<vmem>>, vector<64x32xf32>
    %cst = arith.constant dense<0.000000e+00> : vector<32xf32>
    %1 = vector.multi_reduction <add>, %0, %cst [0] : vector<64x32xf32> to vector<32xf32>
    %2 = vector.shape_cast %1 : vector<32xf32> to vector<1x32xf32>
    %cst_1 = arith.constant 6.400000e+01 : f32
    %3 = vector.broadcast %cst_1 : f32 to vector<1x32xf32>
    %4 = arith.divf %2, %3 : vector<1x32xf32>
    %5 = vector.broadcast %4 : vector<1x32xf32> to vector<64x32xf32>
    %6 = arith.subf %0, %5 : vector<64x32xf32>
    %7 = arith.mulf %6, %6 : vector<64x32xf32>
    %cst_2 = arith.constant dense<0.000000e+00> : vector<32xf32>
    %8 = vector.multi_reduction <add>, %7, %cst_2 [0] : vector<64x32xf32> to vector<32xf32>
    %9 = vector.shape_cast %8 : vector<32xf32> to vector<1x32xf32>
    %cst_3 = arith.constant 6.400000e+01 : f32
    %10 = vector.broadcast %cst_3 : f32 to vector<1x32xf32>
    %11 = arith.divf %9, %10 : vector<1x32xf32>
    %12 = vector.broadcast %4 : vector<1x32xf32> to vector<64x32xf32>
    %13 = arith.subf %0, %12 : vector<64x32xf32>
    %cst_4 = arith.constant 9.99999974E-6 : f32
    %14 = vector.broadcast %cst_4 : f32 to vector<1x32xf32>
    %15 = arith.addf %11, %14 : vector<1x32xf32>
    %16 = math.rsqrt %15 : vector<1x32xf32>
    %17 = vector.broadcast %16 : vector<1x32xf32> to vector<64x32xf32>
    %18 = arith.mulf %13, %17 : vector<64x32xf32>
    %c0_5 = arith.constant 0 : index
    %c0_6 = arith.constant 0 : index
    %19 = vector.load %arg1[%c0_5, %c0_6] : memref<1x32xf32, #tpu.memory_space<vmem>>, vector<1x32xf32>
    %20 = vector.broadcast %19 : vector<1x32xf32> to vector<64x32xf32>
    %21 = arith.mulf %18, %20 : vector<64x32xf32>
    %c0_7 = arith.constant 0 : index
    %c0_8 = arith.constant 0 : index
    %22 = vector.load %arg2[%c0_7, %c0_8] : memref<1x32xf32, #tpu.memory_space<vmem>>, vector<1x32xf32>
    %23 = vector.broadcast %22 : vector<1x32xf32> to vector<64x32xf32>
    %24 = arith.addf %21, %23 : vector<64x32xf32>
    %25 = arith.truncf %24 : vector<64x32xf32> to vector<64x32xbf16>
    %c0_9 = arith.constant 0 : index
    %c0_10 = arith.constant 0 : index
    %26 = vector.load %arg9[%c0_9, %c0_10] : memref<64x32xbf16, #tpu.memory_space<vmem>>, vector<64x32xbf16>
    tpu.vector_store %arg9[%c0_9, %c0_10], %25 {strides = array<i32>} : memref<64x32xbf16, #tpu.memory_space<vmem>>, vector<64x32xbf16>,
    %c0_11 = arith.constant 0 : index
    %c0_12 = arith.constant 0 : index
    %27 = vector.load %arg3[%c0_11, %c0_12] : memref<32x32xbf16, #tpu.memory_space<vmem>>, vector<32x32xbf16>
    %cst_13 = arith.constant dense<0.000000e+00> : vector<64x32xf32>
    %28 = tpu.matmul %25, %27, %cst_13 {dimension_numbers = #tpu.dot_dimension_numbers<[1], [0], [0], [1], [0, 0, 1, 1], [], []>} : vector<64x32xbf16>, vector<32x32xbf16>, vector<64x32xf32> -> vector<64x32xf32>
    %c0_14 = arith.constant 0 : index
    %c0_15 = arith.constant 0 : index
    %29 = vector.load %arg4[%c0_14, %c0_15] : memref<1x32xf32, #tpu.memory_space<vmem>>, vector<1x32xf32>
    %30 = vector.broadcast %29 : vector<1x32xf32> to vector<64x32xf32>
    %31 = arith.addf %28, %30 : vector<64x32xf32>
    %c0_16 = arith.constant 0 : index
    %c0_17 = arith.constant 0 : index
    %32 = vector.load %arg5[%c0_16, %c0_17] : memref<32x32xbf16, #tpu.memory_space<vmem>>, vector<32x32xbf16>
    %cst_18 = arith.constant dense<0.000000e+00> : vector<64x32xf32>
    %33 = tpu.matmul %25, %32, %cst_18 {dimension_numbers = #tpu.dot_dimension_numbers<[1], [0], [0], [1], [0, 0, 1, 1], [], []>} : vector<64x32xbf16>, vector<32x32xbf16>, vector<64x32xf32> -> vector<64x32xf32>
    %c0_19 = arith.constant 0 : index
    %c0_20 = arith.constant 0 : index
    %34 = vector.load %arg6[%c0_19, %c0_20] : memref<1x32xf32, #tpu.memory_space<vmem>>, vector<1x32xf32>
    %35 = vector.broadcast %34 : vector<1x32xf32> to vector<64x32xf32>
    %36 = arith.addf %33, %35 : vector<64x32xf32>
    %c0_21 = arith.constant 0 : index
    %c0_22 = arith.constant 0 : index
    %37 = vector.load %arg7[%c0_21, %c0_22] : memref<32x32xbf16, #tpu.memory_space<vmem>>, vector<32x32xbf16>
    %cst_23 = arith.constant dense<0.000000e+00> : vector<64x32xf32>
    %38 = tpu.matmul %25, %37, %cst_23 {dimension_numbers = #tpu.dot_dimension_numbers<[1], [0], [0], [1], [0, 0, 1, 1], [], []>} : vector<64x32xbf16>, vector<32x32xbf16>, vector<64x32xf32> -> vector<64x32xf32>
    %c0_24 = arith.constant 0 : index
    %c0_25 = arith.constant 0 : index
    %39 = vector.load %arg8[%c0_24, %c0_25] : memref<1x32xf32, #tpu.memory_space<vmem>>, vector<1x32xf32>
    %40 = vector.broadcast %39 : vector<1x32xf32> to vector<64x32xf32>
    %41 = arith.addf %38, %40 : vector<64x32xf32>
    %42 = vector.shape_cast %31 : vector<64x32xf32> to vector<64x4x8xf32>
    %43 = tpu.transpose %42, [1, 0, 2] : vector<64x4x8xf32> -> vector<4x64x8xf32>
    %44 = arith.truncf %43 : vector<4x64x8xf32> to vector<4x64x8xbf16>
    %c0_26 = arith.constant 0 : index
    %c0_27 = arith.constant 0 : index
    %c0_28 = arith.constant 0 : index
    %45 = vector.load %arg10[%c0_26, %c0_27, %c0_28] : memref<4x64x8xbf16, #tpu.memory_space<vmem>>, vector<4x64x8xbf16>
    tpu.vector_store %arg10[%c0_26, %c0_27, %c0_28], %44 {strides = array<i32>} : memref<4x64x8xbf16, #tpu.memory_space<vmem>>, vector<4x64x8xbf16>,
    %46 = vector.shape_cast %41 : vector<64x32xf32> to vector<64x4x8xf32>
    %47 = tpu.transpose %46, [1, 0, 2] : vector<64x4x8xf32> -> vector<4x64x8xf32>
    %48 = arith.truncf %47 : vector<4x64x8xf32> to vector<4x64x8xbf16>
    %c0_29 = arith.constant 0 : index
    %c0_30 = arith.constant 0 : index
    %c0_31 = arith.constant 0 : index
    %49 = vector.load %arg12[%c0_29, %c0_30, %c0_31] : memref<4x64x8xbf16, #tpu.memory_space<vmem>>, vector<4x64x8xbf16>
    tpu.vector_store %arg12[%c0_29, %c0_30, %c0_31], %48 {strides = array<i32>} : memref<4x64x8xbf16, #tpu.memory_space<vmem>>, vector<4x64x8xbf16>,
    %50 = tpu.transpose %36, [1, 0] : vector<64x32xf32> -> vector<32x64xf32>
    %51 = vector.shape_cast %50 : vector<32x64xf32> to vector<4x8x64xf32>
    %52 = arith.truncf %51 : vector<4x8x64xf32> to vector<4x8x64xbf16>
    %c0_32 = arith.constant 0 : index
    %c0_33 = arith.constant 0 : index
    %c0_34 = arith.constant 0 : index
    %53 = vector.load %arg11[%c0_32, %c0_33, %c0_34] : memref<4x8x64xbf16, #tpu.memory_space<vmem>>, vector<4x8x64xbf16>
    tpu.vector_store %arg11[%c0_32, %c0_33, %c0_34], %52 {strides = array<i32>} : memref<4x8x64xbf16, #tpu.memory_space<vmem>>, vector<4x8x64xbf16>,
    return
  }
}

</mosaic_0001>

<bundles_post_ra>
// kernel: tpu_custom_call.1
= control target key start
LH: loop header
LB: loop body
LE: loop exit
PB: predicated region body
PF: predicated region fallthrough
CT: control target
= control target key end

     0   :  { %vm46_vm0 = vcmask 261120   ;;  %s4661_s0 = inlined_call_operand.vmem [shape: f32[64,32], index: 0, kind: input, shape index: {}]   ;;  %s4662_s1 = inlined_call_operand.vmem [shape: f32[1,32], index: 1, kind: input, shape index: {}]   ;;  %s4663_s2 = inlined_call_operand.vmem [shape: f32[1,32], index: 2, kind: input, shape index: {}]   ;;  %s4664_s3 = inlined_call_operand.vmem [shape: bf16[32,32], index: 3, kind: input, shape index: {}]   ;;  %s4665_s4 = inlined_call_operand.vmem [shape: f32[1,32], index: 4, kind: input, shape index: {}]   ;;  %s4666_s5 = inlined_call_operand.vmem [shape: bf16[32,32], index: 5, kind: input, shape index: {}]   ;;  %s4667_s6 = inlined_call_operand.vmem [shape: f32[1,32], index: 6, kind: input, shape index: {}]   ;;  %s4668_s7 = inlined_call_operand.vmem [shape: bf16[32,32], index: 7, kind: input, shape index: {}]   ;;  %s4669_s8 = inlined_call_operand.vmem [shape: f32[1,32], index: 8, kind: input, shape index: {}]   ;;  %s4670_s9 = inlined_call_operand.vmem [shape: bf16[64,32], index: 9, kind: output, shape index: {0}]   ;;  %s4671_s10 = inlined_call_operand.vmem [shape: bf16[4,64,8], index: 10, kind: output, shape index: {1}]   ;;  %s4672_s11 = inlined_call_operand.hbm [shape: bf16[4,8,64], index: 11, kind: output, shape index: {2}]   ;;  %s4673_s12 = inlined_call_operand.vmem [shape: bf16[4,64,8], index: 12, kind: output, shape index: {3}]  }
   0x1   :  { %v3457_v0 = vld [vmem:[%s4664_s3] sm:$0xff]   ;;  %v3458_v1 = vld [vmem:[%s4664_s3 + $0x8] sm:$0xff]   ;;  %v40_v4 = vld [vmem:[%s4661_s0 + $0x10] sm:$0xff] }
   0x2   :  { %3408 = vmatprep.subr.bf16.mxu0 %v3457_v0  ;;  %3444 = vmatprep.subr.bf16.mxu1 %v3457_v0  ;;  %v38_v2 = vld [vmem:[%s4661_s0] sm:$0xff]  ;;  %v39_v3 = vld [vmem:[%s4661_s0 + $0x8] sm:$0xff]  ;;  %v41_v5 = vld [vmem:[%s4661_s0 + $0x18] sm:$0xff]  ;;  %v50_v8 = vsel %vm46_vm0, %v40_v4, 0.0 }
   0x3   :  { %3409 = vmatpush3.bf16.msra.mxu0 %v3457_v0  ;;  %3446 = vmatpush3.bf16.msra.mxu1 %v3457_v0  ;;  %v47_v6 = vsel %vm46_vm0, %v38_v2, 0.0  ;;  %v48_v7 = vsel %vm46_vm0, %v39_v3, 0.0  ;;  %v42_v9 = vld [vmem:[%s4661_s0 + $0x20] sm:$0xff]  ;;  %v43_v12 = vld [vmem:[%s4661_s0 + $0x28] sm:$0xff]  ;;  %v52_v13 = vsel %vm46_vm0, %v41_v5, 0.0  ;;  %v44_v15 = vld [vmem:[%s4661_s0 + $0x30] sm:$0xff] }
   0x4   :  { %3410 = vmatprep.subr.bf16.mxu0 %v3458_v1  ;;  %3445 = vmatprep.subr.bf16.mxu1 %v3458_v1  ;;  %v49_v10 = vadd.f32 %v48_v7, %v47_v6  ;;  %v3589_v11 = vld [vmem:[%s4668_s7] sm:$0xff]   ;;  %v54_v16 = vsel %vm46_vm0, %v42_v9, 0.0  ;;  %v56_v19 = vsel %vm46_vm0, %v43_v12, 0.0 }
   0x5   :  { %v3603_v18 = vld [vmem:[%s4666_s5] sm:$0xff]  }
   0x6   :  { %v51_v14 = vadd.f32 %v50_v8, %v49_v10 }
   0x7   :  { %3411 = vmatpush3.bf16.msra.mxu0 %v3458_v1  ;;  %3447 = vmatpush3.bf16.msra.mxu1 %v3458_v1 }
   0x8   :  { %v53_v17 = vadd.f32 %v52_v13, %v51_v14  ;;  %3432 = vmatprep.subr.bf16.mxu0 %v3589_v11 }
   0x9   :  { %18 = vsyncpa [#allocation3], 0  ;;  %v45_v20 = vld [vmem:[%s4661_s0 + $0x38] sm:$0xff]  ;;  %3420 = vmatprep.subr.bf16.mxu1 %v3603_v18  ;;  %v58_v22 = vsel %vm46_vm0, %v44_v15, 0.0  ;;  %v3191_v10 = vld [vmem:[%s4662_s1] ss:$0 sm:$0xff] }
   0xa   :  { %v55_v21 = vadd.f32 %v54_v16, %v53_v17  ;;  %v60_v24 = vsel %vm46_vm0, %v45_v20, 0.0  ;;  %vm180_vm1 = vcmask 257024   ;;  %v3192_v16 = vld [vmem:[%s4663_s2] ss:$0 sm:$0xff]  ;;  %s3489_s26 = smov 120   ;;  %s3491_s27 = smov 104  }
   0xb   :  { %vm1761_vm2 = vcmask 60416   ;;  %s3494_s0 = smov [#allocation2]   ;;  %vm3158_vm3 = vcmask 519168  }
   0xc   :  { %v57_v23 = vadd.f32 %v56_v19, %v55_v21 }
   0xe   :  { %v59_v25 = vadd.f32 %v58_v22, %v57_v23 }
  0x10   :  { %v61_v26 = vadd.f32 %v60_v24, %v59_v25 }
  0x12   :  { %v62_v27 = vrot.slane %v61_v26, 4 }
  0x14   :  { %v63_v28 = vadd.f32 %v62_v27, %v61_v26 }
  0x16   :  { %v64_v29 = vrot.slane %v63_v28, 2 }
  0x18   :  { %v65_v30 = vadd.f32 %v64_v29, %v63_v28 }
  0x1a   :  { %v66_v31 = vrot.slane %v65_v30, 1 }
  0x1c   :  { %v67_v32 = vadd.f32 %v66_v31, %v65_v30 }
  0x1e   :  { %v69_v33 = vmul.f32 0.015625, %v67_v32 }
  0x20   :  { %v70_v34 = vsub.f32 %v38_v2, %v69_v33  ;;  %v71_v35 = vsub.f32 %v39_v3, %v69_v33  ;;  %v72_v36 = vsub.f32 %v40_v4, %v69_v33  ;;  %v73_v37 = vsub.f32 %v41_v5, %v69_v33 }
  0x21   :  { %v74_v38 = vsub.f32 %v42_v9, %v69_v33  ;;  %v75_v39 = vsub.f32 %v43_v12, %v69_v33  ;;  %v76_v44 = vsub.f32 %v44_v15, %v69_v33  ;;  %v77_v50 = vsub.f32 %v45_v20, %v69_v33 }
  0x22   :  { %v78_v40 = vmul.f32 %v70_v34, %v70_v34  ;;  %v79_v41 = vmul.f32 %v71_v35, %v71_v35  ;;  %v80_v42 = vmul.f32 %v72_v36, %v72_v36  ;;  %v81_v43 = vmul.f32 %v73_v37, %v73_v37 }
  0x23   :  { %v82_v45 = vmul.f32 %v74_v38, %v74_v38  ;;  %v83_v51 = vmul.f32 %v75_v39, %v75_v39  ;;  %v84_v54 = vmul.f32 %v76_v44, %v76_v44  ;;  %v85_v57 = vmul.f32 %v77_v50, %v77_v50 }
  0x24   :  { %v86_v46 = vsel %vm46_vm0, %v78_v40, 0.0  ;;  %v87_v47 = vsel %vm46_vm0, %v79_v41, 0.0  ;;  %v89_v48 = vsel %vm46_vm0, %v80_v42, 0.0  ;;  %v91_v52 = vsel %vm46_vm0, %v81_v43, 0.0 }
  0x25   :  { %v88_v49 = vadd.f32 %v87_v47, %v86_v46  ;;  %v93_v55 = vsel %vm46_vm0, %v82_v45, 0.0  ;;  %v95_v58 = vsel %vm46_vm0, %v83_v51, 0.0  ;;  %v97_v60 = vsel %vm46_vm0, %v84_v54, 0.0  ;;  %v3460_v46 = vld [vmem:[%s4668_s7 + $0x8] sm:$0xff]  }
  0x26   :  { %v99_v62 = vsel %vm46_vm0, %v85_v57, 0.0  ;;  %v3462_v51 = vld [vmem:[%s4666_s5 + $0x8] sm:$0xff]   ;;  %s3172_s5 = sshll.u32 %s3494_s0, 4  ;;  %s4581_s5 = int_to_ptr.vmem [resolvable:$true] %s3172_s5 }
  0x27   :  { %v90_v53 = vadd.f32 %v89_v48, %v88_v49  ;;  %p3470_p1 = scmp.lt.s32.totalorder %s4581_s5, %s4581_s5 }
  0x29   :  { %v92_v56 = vadd.f32 %v91_v52, %v90_v53 }
  0x2b   :  { %v94_v59 = vadd.f32 %v93_v55, %v92_v56 }
  0x2d   :  { %v96_v61 = vadd.f32 %v95_v58, %v94_v59 }
  0x2f   :  { %v98_v63 = vadd.f32 %v97_v60, %v96_v61 }
  0x31   :  { %v100_v0 = vadd.f32 %v99_v62, %v98_v63 }
  0x33   :  { %v101_v1 = vrot.slane %v100_v0, 4 }
  0x35   :  { %v102_v2 = vadd.f32 %v101_v1, %v100_v0 }
  0x37   :  { %v103_v3 = vrot.slane %v102_v2, 2 }
  0x39   :  { %v104_v4 = vadd.f32 %v103_v3, %v102_v2 }
  0x3b   :  { %v105_v5 = vrot.slane %v104_v4, 1 }
  0x3d   :  { %v106_v6 = vadd.f32 %v105_v5, %v104_v4 }
  0x3f   :  { %v107_v7 = vmul.f32 0.015625, %v106_v6 }
  0x41   :  { %v108_v8 = vadd.f32 1e-05, %v107_v7 }
  0x43   :  { %3463 = vrsqrt.f32 %v108_v8 }
  0x4d   :  { %v3464_v9 = vpop.eup %3463 }
  0x4e   :  { %v110_v12 = vmul.f32 %v3464_v9, %v70_v34  ;;  %v111_v13 = vmul.f32 %v3464_v9, %v71_v35  ;;  %v114_v14 = vmul.f32 %v3464_v9, %v74_v38  ;;  %v115_v15 = vmul.f32 %v3464_v9, %v75_v39 }
  0x4f   :  { %v112_v17 = vmul.f32 %v3464_v9, %v72_v36  ;;  %v113_v19 = vmul.f32 %v3464_v9, %v73_v37  ;;  %v116_v20 = vmul.f32 %v3464_v9, %v76_v44  ;;  %v117_v21 = vmul.f32 %v3464_v9, %v77_v50 }
  0x50   :  { %v125_v22 = vmul.f32 %v3191_v10, %v110_v12  ;;  %v126_v23 = vmul.f32 %v3191_v10, %v111_v13  ;;  %v129_v24 = vmul.f32 %v3191_v10, %v114_v14  ;;  %v130_v25 = vmul.f32 %v3191_v10, %v115_v15 }
  0x51   :  { %v127_v26 = vmul.f32 %v3191_v10, %v112_v17  ;;  %v128_v27 = vmul.f32 %v3191_v10, %v113_v19  ;;  %v131_v28 = vmul.f32 %v3191_v10, %v116_v20  ;;  %v132_v29 = vmul.f32 %v3191_v10, %v117_v21  ;;  %v3215_v21 = vld [vmem:[%s4669_s8] ss:$0 sm:$0xff] }
  0x52   :  { %v140_v30 = vadd.f32 %v3192_v16, %v125_v22  ;;  %v141_v31 = vadd.f32 %v3192_v16, %v126_v23  ;;  %v144_v32 = vadd.f32 %v3192_v16, %v129_v24  ;;  %v145_v33 = vadd.f32 %v3192_v16, %v130_v25 }
  0x53   :  { %v142_v34 = vadd.f32 %v3192_v16, %v127_v26  ;;  %v143_v35 = vadd.f32 %v3192_v16, %v128_v27  ;;  %v146_v38 = vadd.f32 %v3192_v16, %v131_v28  ;;  %v147_v39 = vadd.f32 %v3192_v16, %v132_v29 }
  0x54   :  { %v148_v36 = vpack.c.bf16 %v141_v31, %v140_v30  ;;  %v3318_v37 = vpack.c.bf16 %v140_v30, %v140_v30  ;;  %v3319_v40 = vpack.c.bf16 %v141_v31, %v141_v31  ;;  %v150_v41 = vpack.c.bf16 %v145_v33, %v144_v32 }
  0x55   :  { %v3322_v42 = vpack.c.bf16 %v144_v32, %v144_v32  ;;  %v3323_v43 = vpack.c.bf16 %v145_v33, %v145_v33  ;;  %v149_v44 = vpack.c.bf16 %v143_v35, %v142_v34  ;;  %v3320_v45 = vpack.c.bf16 %v142_v34, %v142_v34  ;;  %v3208_v32 = vld [vmem:[%s4667_s6] ss:$0 sm:$0xff]  ;;  %s3465_s6 = scalar_lea.vmem %s4581_s5, 256 }
  0x56   :  { %181 = vst.msk [vmem:[%s4670_s9] sm:$0xf] %vm180_vm1, %v3318_v37  ;;  %182 = vst.msk [vmem:[%s4670_s9 + $0x4] sm:$0xf] %vm180_vm1, %v3319_v40  ;;  %3412 = vmatprep.mubr.msk.bf16.mxu0 %vm46_vm0, %v148_v36  ;;  %3416 = vmatprep.mubr.msk.bf16.mxu1 %vm46_vm0, %v150_v41  ;;  %v3321_v47 = vpack.c.bf16 %v143_v35, %v143_v35  ;;  %v151_v48 = vpack.c.bf16 %v147_v39, %v146_v38  ;;  %v3492_v33 = vmov 1983009808   ;;  %v550_v35 = vlaneseq  ;;  %p3466_p0 = scmp.ne.s32.totalorder %s4581_s5, %s3465_s6  ;;  %p3471_p2 = scmp.lt.s32.totalorder %s3465_s6, %s3465_s6 }
  0x57   :  { %v3324_v49 = vpack.c.bf16 %v146_v38, %v146_v38  ;;  %185 = vst.msk [vmem:[%s4670_s9 + $0x10] sm:$0xf] %vm180_vm1, %v3322_v42  ;;  %186 = vst.msk [vmem:[%s4670_s9 + $0x14] sm:$0xf] %vm180_vm1, %v3323_v43  ;;  %3413 = vmatmul.mubr.msk.bf16.vlgmr.msra.gmra.mrb[0].mxu0 %vm46_vm0, %v149_v44  ;;  %v3325_v50 = vpack.c.bf16 %v147_v39, %v147_v39  ;;  %v548_v34 = vunpack.c.l.s4 %v3492_v33  ;;  %v3493_v39 = vmov 1934713408  }
  0x58   :  { %183 = vst.msk [vmem:[%s4670_s9 + $0x8] sm:$0xf] %vm180_vm1, %v3320_v45  ;;  %184 = vst.msk [vmem:[%s4670_s9 + $0xc] sm:$0xf] %vm180_vm1, %v3321_v47  ;;  %3417 = vmatmul.mubr.msk.bf16.vlgmr.msra.gmra.mrb[0].mxu1 %vm46_vm0, %v151_v48  ;;  %3433 = vmatpush3.bf16.msra.mxu0 %v3589_v11  ;;  %v3201_v11 = vld [vmem:[%s4665_s4] ss:$0 sm:$0xff]  ;;  %p3472_p3 = por %p3471_p2, %p3470_p1 }
  0x59   :  { %187 = vst.msk [vmem:[%s4670_s9 + $0x18] sm:$0xf] %vm180_vm1, %v3324_v49  ;;  %188 = vst.msk [vmem:[%s4670_s9 + $0x1c] sm:$0xf] %vm180_vm1, %v3325_v50  ;;  %3434 = vmatprep.subr.bf16.mxu0 %v3460_v46  ;;  %3436 = vmatprep.mubr.msk.bf16.mxu0 %vm46_vm0, %v148_v36  ;;  %s3490_s4 = smov 112   ;;  %v551_v42 = vshrl.u32 %v550_v35, 7 }
  0x5a   :  { %3421 = vmatpush3.bf16.msra.mxu1 %v3603_v18  ;;  %3424 = vmatprep.mubr.msk.bf16.mxu1 %vm46_vm0, %v148_v36  ;;  %v580_v36 = vunpack.c.l.s4 %v3493_v39  ;;  %p3473_p4 = pnand %p3472_p3, %p3466_p0 }
  0x5b   :  { %3422 = vmatprep.subr.bf16.mxu1 %v3462_v51 }
  0x5c   :  { %3435 = vmatpush3.bf16.msra.mxu0 %v3460_v46 }
  0x5e   :  { %3423 = vmatpush3.bf16.msra.mxu1 %v3462_v51 }
  0x5f   :  { %3437 = vmatmul.mubr.msk.bf16.vlgmr.msra.gmra.mrb[4].mxu0 %vm46_vm0, %v149_v44 }
  0x60   :  { %3440 = vmatprep.mubr.msk.bf16.mxu0 %vm46_vm0, %v150_v41 }
  0x61   :  { %3425 = vmatmul.mubr.msk.bf16.vlgmr.msra.gmra.mrb[4].mxu1 %vm46_vm0, %v149_v44  ;;  %v581_v44 = vunpack.c.0.s8 %v580_v36 }
  0x62   :  { %3428 = vmatprep.mubr.msk.bf16.mxu1 %vm46_vm0, %v150_v41  ;;  %v549_v41 = vunpack.c.0.s8 %v548_v34 }
  0x64   :  { %v3839_v47 = vsub.s32 %v549_v41, %v551_v42 }
  0x67   :  { %3441 = vmatmul.mubr.msk.bf16.gmra.mrb[8].mxu0 %vm46_vm0, %v151_v48 }
  0x69   :  { %3429 = vmatmul.mubr.msk.bf16.gmra.mrb[8].mxu1 %vm46_vm0, %v151_v48 }
 0x12a   :  { %v3414_v18 = vpop.f32.mrb[0].mxu0 }
 0x12b   :  { %v3681_v52 = vadd.f32 %v3414_v18, %v3201_v11  ;;  %v3418_v53 = vpop.f32.mrb[0].mxu1  ;;  %v258_v54 = vpop.f32.mrb[1].mxu0 }
 0x12c   :  { %v3683_v55 = vadd.f32 %v3418_v53, %v3201_v11  ;;  %v274_v56 = vpop.f32.mrb[1].mxu1  ;;  %v3415_v57 = vpop.f32.mrb[2].mxu0  ;;  %v3725_v16 = vadd.f32 %v3201_v11, %v258_v54 }
 0x12d   :  { %v3419_v58 = vpop.f32.mrb[2].mxu1  ;;  %477 = vrot.lane.b32.xlu1 %v3681_v52, %s3489_s26  ;;  %v3687_v59 = vadd.f32 %v3415_v57, %v3201_v11  ;;  %v261_v60 = vpop.f32.mrb[3].mxu0  ;;  %v3731_v17 = vadd.f32 %v3201_v11, %v274_v56 }
 0x12e   :  { %485 = vrot.lane.b32.xlu0 %v3683_v55, %s3489_s26  ;;  %v277_v61 = vpop.f32.mrb[3].mxu1  ;;  %v3695_v63 = vadd.f32 %v3419_v58, %v3201_v11  ;;  %v3743_v20 = vadd.f32 %v3201_v11, %v261_v60 }
 0x12f   :  { %v3737_v19 = vadd.f32 %v3201_v11, %v277_v61  ;;  %v3845_v11 = vsub.s32 %v581_v44, %v551_v42 }
 0x131   :  { %479 = vrot.lane.b32.xlu1 %v3687_v59, %s3489_s26 }
 0x132   :  { %501 = vrot.lane.b32.xlu0 %v3681_v52, %s3490_s4  ;;  %v3438_v62 = vpop.f32.mrb[4].mxu0 }
 0x133   :  { %v434_v0 = vpop.f32.mrb[5].mxu0  ;;  %v3764_v23 = vadd.f32 %v3438_v62, %v3215_v21 }
 0x134   :  { %v3439_v1 = vpop.f32.mrb[6].mxu0  ;;  %v3697_v2 = vpop.f32.mrb[4].mxu1  ;;  %v3782_v25 = vadd.f32 %v3215_v21, %v434_v0 }
 0x135   :  { %487 = vrot.lane.b32.xlu1 %v3695_v63, %s3489_s26  ;;  %v437_v3 = vpop.f32.mrb[7].mxu0  ;;  %v3701_v4 = vpop.f32.mrb[5].mxu1  ;;  %v3760_v22 = vadd.f32 %v3439_v1, %v3215_v21  ;;  %v355_v53 = vadd.f32 %v3697_v2, %v3208_v32 }
 0x136   :  { %509 = vrot.lane.b32.xlu0 %v3683_v55, %s3490_s4  ;;  %v3705_v5 = vpop.f32.mrb[6].mxu1  ;;  %v3780_v24 = vadd.f32 %v3215_v21, %v437_v3  ;;  %v347_v37 = vadd.f32 %v3208_v32, %v3701_v4 }
 0x137   :  { %v3707_v6 = vpop.f32.mrb[7].mxu1  ;;  %v358_v54 = vadd.f32 %v3705_v5, %v3208_v32 }
 0x138   :  { %v350_v46 = vadd.f32 %v3208_v32, %v3707_v6 }
 0x139   :  { %503 = vrot.lane.b32.xlu1 %v3687_v59, %s3490_s4 }
 0x13a   :  { %525 = vrot.lane.b32.xlu0 %v3681_v52, %s3491_s27  ;;  %v3442_v7 = vpop.f32.mrb[8].mxu0 }
 0x13b   :  { %v450_v8 = vpop.f32.mrb[9].mxu0  ;;  %v3796_v27 = vadd.f32 %v3442_v7, %v3215_v21 }
 0x13c   :  { %v3443_v9 = vpop.f32.mrb[10].mxu0  ;;  %v3713_v10 = vpop.f32.mrb[8].mxu1  ;;  %v3814_v29 = vadd.f32 %v3215_v21, %v450_v8 }
 0x13d   :  { %511 = vrot.lane.b32.xlu1 %v3695_v63, %s3490_s4  ;;  %v453_v12 = vpop.f32.mrb[11].mxu0  ;;  %v3717_v13 = vpop.f32.mrb[9].mxu1  ;;  %v3792_v26 = vadd.f32 %v3443_v9, %v3215_v21 }
 0x13e   :  { %533 = vrot.lane.b32.xlu0 %v3683_v55, %s3491_s27  ;;  %v3721_v14 = vpop.f32.mrb[10].mxu1  ;;  %v3808_v28 = vadd.f32 %v3215_v21, %v453_v12 }
 0x13f   :  { %v3723_v15 = vpop.f32.mrb[11].mxu1  ;;  %v3858_v1 = vadd.f32 %v3721_v14, %v3208_v32 }
 0x140   :  { %v3861_v2 = vadd.f32 %v3208_v32, %v3723_v15 }
 0x141   :  { %527 = vrot.lane.b32.xlu1 %v3687_v59, %s3491_s27 }
 0x142   :  { %473 = vrot.lane.b32.xlu0 %v3725_v16, %s3489_s26 }
 0x145   :  { %535 = vrot.lane.b32.xlu1 %v3695_v63, %s3491_s27 }
 0x146   :  { %481 = vrot.lane.b32.xlu0 %v3731_v17, %s3489_s26 }
 0x149   :  { %483 = vrot.lane.b32.xlu1 %v3737_v19, %s3489_s26 }
 0x14a   :  { %497 = vrot.lane.b32.xlu0 %v3725_v16, %s3490_s4 }
 0x14d   :  { %499 = vrot.lane.b32.xlu1 %v3743_v20, %s3490_s4 }
 0x14e   :  { %505 = vrot.lane.b32.xlu0 %v3731_v17, %s3490_s4 }
 0x151   :  { %507 = vrot.lane.b32.xlu1 %v3737_v19, %s3490_s4 }
 0x152   :  { %521 = vrot.lane.b32.xlu0 %v3725_v16, %s3491_s27 }
 0x155   :  { %523 = vrot.lane.b32.xlu1 %v3743_v20, %s3491_s27 }
 0x156   :  { %529 = vrot.lane.b32.xlu0 %v3731_v17, %s3491_s27 }
 0x159   :  { %531 = vrot.lane.b32.xlu1 %v3737_v19, %s3491_s27 }
 0x15a   :  { %475 = vrot.lane.b32.xlu0 %v3743_v20, %s3489_s26 }
 0x15d   :  { %1808 = vrot.lane.b32.xlu1 %v3760_v22, %s3489_s26 }
 0x15e   :  { %1806 = vrot.lane.b32.xlu0 %v3764_v23, %s3489_s26 }
 0x161   :  { %1832 = vrot.lane.b32.xlu1 %v3760_v22, %s3490_s4 }
 0x162   :  { %1830 = vrot.lane.b32.xlu0 %v3764_v23, %s3490_s4 }
 0x165   :  { %1856 = vrot.lane.b32.xlu1 %v3760_v22, %s3491_s27 }
 0x166   :  { %1854 = vrot.lane.b32.xlu0 %v3764_v23, %s3491_s27 }
 0x169   :  { %1804 = vrot.lane.b32.xlu1 %v3780_v24, %s3489_s26 }
 0x16a   :  { %1802 = vrot.lane.b32.xlu0 %v3782_v25, %s3489_s26 }
 0x16d   :  { %1828 = vrot.lane.b32.xlu1 %v3780_v24, %s3490_s4 }
 0x16e   :  { %1826 = vrot.lane.b32.xlu0 %v3782_v25, %s3490_s4 }
 0x171   :  { %1852 = vrot.lane.b32.xlu1 %v3780_v24, %s3491_s27 }
 0x172   :  { %1850 = vrot.lane.b32.xlu0 %v3782_v25, %s3491_s27 }
 0x175   :  { %1816 = vrot.lane.b32.xlu1 %v3792_v26, %s3489_s26 }
 0x176   :  { %1814 = vrot.lane.b32.xlu0 %v3796_v27, %s3489_s26 }
 0x179   :  { %1840 = vrot.lane.b32.xlu1 %v3792_v26, %s3490_s4 }
 0x17a   :  { %1838 = vrot.lane.b32.xlu0 %v3796_v27, %s3490_s4 }
 0x17d   :  { %1812 = vrot.lane.b32.xlu1 %v3808_v28, %s3489_s26 }
 0x17e   :  { %1862 = vrot.lane.b32.xlu0 %v3796_v27, %s3491_s27 }
 0x181   :  { %1836 = vrot.lane.b32.xlu1 %v3808_v28, %s3490_s4 }
 0x182   :  { %1810 = vrot.lane.b32.xlu0 %v3814_v29, %s3489_s26 }
 0x185   :  { %1860 = vrot.lane.b32.xlu1 %v3808_v28, %s3491_s27 }
 0x186   :  { %1834 = vrot.lane.b32.xlu0 %v3814_v29, %s3490_s4 }
 0x189   :  { %1864 = vrot.lane.b32.xlu1 %v3792_v26, %s3491_s27 }
 0x18a   :  { %1858 = vrot.lane.b32.xlu0 %v3814_v29, %s3491_s27 }
 0x19f   :  { %v478_v30 = vpop.permute.xlu1 %477 }
 0x1a0   :  { %v3828_v31 = vpop.permute.xlu0 %485 }
 0x1a3   :  { %v3833_v38 = vpop.permute.xlu1 %479 }
 0x1a4   :  { %v502_v40 = vpop.permute.xlu0 %501 }
 0x1a5   :  { %v681_v48 = vcombine.low %v3681_v52, %v502_v40  ;;  %v682_v49 = vcombine.high %v3681_v52, %v502_v40  ;;  %v3852_v52 = vadd.f32 %v3713_v10, %v3208_v32 }
 0x1a7   :  { %v3836_v43 = vpop.permute.xlu1 %487  ;;  %v689_v62 = vrot.slane %v681_v48, %v3839_v47  ;;  %v696_v0 = vrot.slane %v682_v49, %v3839_v47 }
 0x1a8   :  { %v510_v45 = vpop.permute.xlu0 %509  ;;  %3122 = vxpose.xlu0.b32.start [1/8] (short) (narrow) %v347_v37, 32 }
 0x1a9   :  { %v953_v50 = vcombine.low %v3683_v55, %v510_v45  ;;  %v954_v51 = vcombine.high %v3683_v55, %v510_v45  ;;  %v363_v55 = vadd.f32 %v3208_v32, %v3717_v13 }
 0x1ab   :  { %v504_v18 = vpop.permute.xlu1 %503  ;;  %v968_v3 = vrot.slane %v954_v51, %v3839_v47 }
 0x1ac   :  { %v526_v56 = vpop.permute.xlu0 %525  ;;  %v749_v57 = vcombine.low %v3687_v59, %v504_v18  ;;  %v750_v58 = vcombine.high %v3687_v59, %v504_v18  ;;  %3123 = vxpose.xlu0.b32.cont [2/8] (short) (narrow) %v350_v46, 32  ;;  %v961_v59 = vrot.slane %v953_v50, %v3839_v47 }
 0x1ad   :  { %v697_v60 = vcombine.low %v478_v30, %v526_v56  ;;  %v698_v61 = vcombine.high %v478_v30, %v526_v56 }
 0x1ae   :  { %v3868_v7 = vrot.slane %v749_v57, %v3839_v47  ;;  %v3871_v8 = vrot.slane %v750_v58, %v3839_v47 }
 0x1af   :  { %v705_v4 = vrot.slane %v697_v60, %v3839_v47  ;;  %v712_v5 = vrot.slane %v698_v61, %v3839_v47  ;;  %v512_v6 = vpop.permute.xlu1 %511 }
 0x1b0   :  { %v534_v9 = vpop.permute.xlu0 %533  ;;  %v1021_v10 = vcombine.low %v3695_v63, %v512_v6  ;;  %v1022_v12 = vcombine.high %v3695_v63, %v512_v6  ;;  %3124 = vxpose.xlu0.b32.cont [3/8] (short) (narrow) %v355_v53, 32 }
 0x1b1   :  { %v713_v13 = vcombine.low %v689_v62, %v705_v4  ;;  %v714_v14 = vcombine.high %v689_v62, %v705_v4  ;;  %v729_v15 = vcombine.low %v696_v0, %v712_v5  ;;  %v730_v21 = vcombine.high %v696_v0, %v712_v5 }
 0x1b2   :  { %v969_v30 = vcombine.low %v3828_v31, %v534_v9  ;;  %v970_v32 = vcombine.high %v3828_v31, %v534_v9  ;;  %v3878_v33 = vrot.slane %v1021_v10, %v3839_v47  ;;  %v3881_v34 = vrot.slane %v1022_v12, %v3839_v47 }
 0x1b3   :  { %v721_v35 = vrot.slane %v713_v13, %v3845_v11  ;;  %v728_v39 = vrot.slane %v714_v14, %v3845_v11  ;;  %v737_v63 = vrot.slane %v729_v15, %v3845_v11  ;;  %v744_v36 = vrot.slane %v730_v21, %v3845_v11  ;;  %v3887_v37 = vpop.permute.xlu1 %527 }
 0x1b4   :  { %v977_v40 = vrot.slane %v969_v30, %v3839_v47  ;;  %v984_v31 = vrot.slane %v970_v32, %v3839_v47  ;;  %v765_v41 = vcombine.low %v3833_v38, %v3887_v37  ;;  %v766_v42 = vcombine.high %v3833_v38, %v3887_v37  ;;  %3125 = vxpose.xlu0.b32.cont [4/8] (short) (narrow) %v358_v54, 32  ;;  %v3895_v44 = vpop.permute.xlu0 %473 }
 0x1b5   :  { %v1225_v45 = vcombine.low %v721_v35, %v728_v39  ;;  %v3226_v46 = vcombine.high %v721_v35, %v728_v39  ;;  %v1241_v48 = vcombine.low %v737_v63, %v744_v36  ;;  %v3227_v49 = vcombine.high %v737_v63, %v744_v36 }
 0x1b6   :  { %v985_v50 = vcombine.low %v961_v59, %v977_v40  ;;  %v986_v51 = vcombine.high %v961_v59, %v977_v40  ;;  %v1001_v18 = vcombine.low %v968_v3, %v984_v31  ;;  %v1002_v53 = vcombine.high %v968_v3, %v984_v31 }
 0x1b7   :  { %v1232_v56 = vrot.slane %v1225_v45, %v3839_v47  ;;  %v1240_v57 = vrot.slane %v3226_v46, %v3839_v47  ;;  %v1248_v58 = vrot.slane %v1241_v48, %v3839_v47  ;;  %v1256_v60 = vrot.slane %v3227_v49, %v3839_v47  ;;  %v3905_v4 = vpop.permute.xlu1 %535 }
 0x1b8   :  { %v993_v54 = vrot.slane %v985_v50, %v3845_v11  ;;  %v1000_v61 = vrot.slane %v986_v51, %v3845_v11  ;;  %v1009_v62 = vrot.slane %v1001_v18, %v3845_v11  ;;  %v1016_v0 = vrot.slane %v1002_v53, %v3845_v11  ;;  %3126 = vxpose.xlu0.b32.cont [5/8] (short) (narrow) %v363_v55, 32  ;;  %v3907_v14 = vpop.permute.xlu0 %481 }
 0x1b9   :  { %v1257_v59 = vcombine.low %v1232_v56, %v1240_v57  ;;  %v1258_v3 = vcombine.high %v1232_v56, %v1240_v57  ;;  %v1273_v5 = vcombine.low %v1248_v58, %v1256_v60  ;;  %v1274_v6 = vcombine.high %v1248_v58, %v1256_v60 }
 0x1ba   :  { %v1497_v9 = vcombine.low %v993_v54, %v1000_v61  ;;  %v3234_v10 = vcombine.high %v993_v54, %v1000_v61  ;;  %v1513_v12 = vcombine.low %v1009_v62, %v1016_v0  ;;  %v3235_v13 = vcombine.high %v1009_v62, %v1016_v0 }
 0x1bb   :  { %v1265_v15 = vrot.slane %v1257_v59, %v3845_v11  ;;  %v1272_v21 = vrot.slane %v1258_v3, %v3845_v11  ;;  %v1281_v30 = vrot.slane %v1273_v5, %v3845_v11  ;;  %v1288_v32 = vrot.slane %v1274_v6, %v3845_v11  ;;  %v3918_v51 = vpop.permute.xlu1 %483 }
 0x1bc   :  { %v1504_v55 = vrot.slane %v1497_v9, %v3839_v47  ;;  %v1512_v35 = vrot.slane %v3234_v10, %v3839_v47  ;;  %v1520_v39 = vrot.slane %v1513_v12, %v3839_v47  ;;  %v1528_v63 = vrot.slane %v3235_v13, %v3839_v47  ;;  %3127 = vxpose.xlu0.b32.cont [6/8] (short) (narrow) %v3861_v2, 32  ;;  %v3924_v61 = vpop.permute.xlu0 %497 }
 0x1bd   :  { %v1289_v36 = vcombine.low %v1265_v15, %v1281_v30  ;;  %v1290_v40 = vcombine.high %v1265_v15, %v1281_v30  ;;  %v1291_v31 = vcombine.low %v1272_v21, %v1288_v32  ;;  %v1292_v45 = vcombine.high %v1272_v21, %v1288_v32 }
 0x1be   :  { %v1529_v46 = vcombine.low %v1504_v55, %v1512_v35  ;;  %v1530_v48 = vcombine.high %v1504_v55, %v1512_v35  ;;  %v1545_v49 = vcombine.low %v1520_v39, %v1528_v63  ;;  %v1546_v50 = vcombine.high %v1520_v39, %v1528_v63 }
 0x1bf   :  { %v3328_v18 = vpack.c.bf16 %v1289_v36, %v1289_v36  ;;  %v3336_v53 = vpack.c.bf16 %v1290_v40, %v1290_v40  ;;  %v3344_v56 = vpack.c.bf16 %v1291_v31, %v1291_v31  ;;  %v3352_v57 = vpack.c.bf16 %v1292_v45, %v1292_v45  ;;  %v3959_v21 = vpop.permute.xlu1 %499 }
 0x1c0   :  { %v1537_v58 = vrot.slane %v1529_v46, %v3845_v11  ;;  %v1544_v60 = vrot.slane %v1530_v48, %v3845_v11  ;;  %v1553_v2 = vrot.slane %v1545_v49, %v3845_v11  ;;  %v1560_v54 = vrot.slane %v1546_v50, %v3845_v11  ;;  %3128 = vxpose.xlu0.b32.cont [7/8] (short) (narrow) %v3852_v52, 32  ;;  %v3988_v35 = vpop.permute.xlu0 %505 }
 0x1c1   :  { %1764 = vst.msk [vmem:[%s4671_s10 + $0x8] sm:$0xf] %vm1761_vm2, %v3328_v18  ;;  %1772 = vst.msk [vmem:[%s4671_s10 + $0x28] sm:$0xf] %vm1761_vm2, %v3336_v53  ;;  %v773_v52 = vrot.slane %v765_v41, %v3839_v47  ;;  %v780_v62 = vrot.slane %v766_v42, %v3839_v47  ;;  %v1037_v0 = vcombine.low %v3836_v43, %v3905_v4 }
 0x1c2   :  { %1780 = vst.msk [vmem:[%s4671_s10 + $0x48] sm:$0xf] %vm1761_vm2, %v3344_v56  ;;  %1788 = vst.msk [vmem:[%s4671_s10 + $0x68] sm:$0xf] %vm1761_vm2, %v3352_v57  ;;  %v1038_v59 = vcombine.high %v3836_v43, %v3905_v4  ;;  %v1561_v3 = vcombine.low %v1537_v58, %v1553_v2  ;;  %v1562_v5 = vcombine.high %v1537_v58, %v1553_v2 }
 0x1c3   :  { %v1563_v6 = vcombine.low %v1544_v60, %v1560_v54  ;;  %v1564_v9 = vcombine.high %v1544_v60, %v1560_v54  ;;  %v781_v10 = vcombine.low %v3868_v7, %v773_v52  ;;  %v782_v12 = vcombine.high %v3868_v7, %v773_v52  ;;  %v4002_v58 = vpop.permute.xlu1 %507 }
 0x1c4   :  { %v797_v41 = vcombine.low %v3871_v8, %v780_v62  ;;  %v798_v13 = vcombine.high %v3871_v8, %v780_v62  ;;  %v3332_v38 = vpack.c.bf16 %v1561_v3, %v1561_v3  ;;  %v3340_v37 = vpack.c.bf16 %v1562_v5, %v1562_v5  ;;  %3129 = vxpose.xlu0.b32.end [8/8] (short) (narrow) %v3858_v1, 32 }
 0x1c5   :  { %v3348_v42 = vpack.c.bf16 %v1563_v6, %v1563_v6  ;;  %v3356_v15 = vpack.c.bf16 %v1564_v9, %v1564_v9  ;;  %v789_v43 = vrot.slane %v781_v10, %v3845_v11  ;;  %v796_v4 = vrot.slane %v782_v12, %v3845_v11 }
 0x1c6   :  { %v805_v30 = vrot.slane %v797_v41, %v3845_v11  ;;  %v812_v7 = vrot.slane %v798_v13, %v3845_v11  ;;  %1768 = vst.msk [vmem:[%s4671_s10 + $0x18] sm:$0xf] %vm1761_vm2, %v3332_v38  ;;  %1776 = vst.msk [vmem:[%s4671_s10 + $0x38] sm:$0xf] %vm1761_vm2, %v3340_v37  ;;  %v1045_v1 = vrot.slane %v1037_v0, %v3839_v47 }
 0x1c7   :  { %1784 = vst.msk [vmem:[%s4671_s10 + $0x58] sm:$0xf] %vm1761_vm2, %v3348_v42  ;;  %1792 = vst.msk [vmem:[%s4671_s10 + $0x78] sm:$0xf] %vm1761_vm2, %v3356_v15  ;;  %v1052_v8 = vrot.slane %v1038_v59, %v3839_v47  ;;  %v545_v32 = vcombine.low %v3725_v16, %v3924_v61  ;;  %v546_v55 = vcombine.high %v3725_v16, %v3924_v61  ;;  %v4004_v59 = vpop.permute.xlu0 %521 }
 0x1c8   :  { %v1293_v39 = vcombine.low %v789_v43, %v796_v4  ;;  %v3228_v63 = vcombine.high %v789_v43, %v796_v4  ;;  %v1309_v36 = vcombine.low %v805_v30, %v812_v7  ;;  %v3229_v40 = vcombine.high %v805_v30, %v812_v7 }
 0x1c9   :  { %v1053_v31 = vcombine.low %v3878_v33, %v1045_v1  ;;  %v1054_v45 = vcombine.high %v3878_v33, %v1045_v1  ;;  %v1069_v46 = vcombine.low %v3881_v34, %v1052_v8  ;;  %v1070_v48 = vcombine.high %v3881_v34, %v1052_v8  ;;  %v4014_v1 = vpop.permute.xlu1 %523 }
 0x1ca   :  { %v1300_v49 = vrot.slane %v1293_v39, %v3839_v47  ;;  %v1308_v50 = vrot.slane %v3228_v63, %v3839_v47  ;;  %v1316_v16 = vrot.slane %v1309_v36, %v3839_v47  ;;  %v1324_v18 = vrot.slane %v3229_v40, %v3839_v47 }
 0x1cb   :  { %v1061_v53 = vrot.slane %v1053_v31, %v3845_v11  ;;  %v1068_v56 = vrot.slane %v1054_v45, %v3845_v11  ;;  %v1077_v57 = vrot.slane %v1069_v46, %v3845_v11  ;;  %v1084_v33 = vrot.slane %v1070_v48, %v3845_v11  ;;  %v530_v48 = vpop.permute.xlu0 %529 }
 0x1cc   :  { %v1325_v60 = vcombine.low %v1300_v49, %v1308_v50  ;;  %v1326_v34 = vcombine.high %v1300_v49, %v1308_v50  ;;  %v1341_v2 = vcombine.low %v1316_v16, %v1324_v18  ;;  %v1342_v54 = vcombine.high %v1316_v16, %v1324_v18 }
 0x1cd   :  { %v1565_v61 = vcombine.low %v1061_v53, %v1068_v56  ;;  %v3236_v52 = vcombine.high %v1061_v53, %v1068_v56  ;;  %v1581_v62 = vcombine.low %v1077_v57, %v1084_v33  ;;  %v3237_v0 = vcombine.high %v1077_v57, %v1084_v33 }
 0x1ce   :  { %v1333_v3 = vrot.slane %v1325_v60, %v3845_v11  ;;  %v1340_v5 = vrot.slane %v1326_v34, %v3845_v11  ;;  %v1349_v6 = vrot.slane %v1341_v2, %v3845_v11  ;;  %v1356_v9 = vrot.slane %v1342_v54, %v3845_v11 }
 0x1cf   :  { %v1572_v10 = vrot.slane %v1565_v61, %v3839_v47  ;;  %v1580_v12 = vrot.slane %v3236_v52, %v3839_v47  ;;  %v1588_v41 = vrot.slane %v1581_v62, %v3839_v47  ;;  %v1596_v13 = vrot.slane %v3237_v0, %v3839_v47 }
 0x1d0   :  { %v1357_v38 = vcombine.low %v1333_v3, %v1349_v6  ;;  %v1358_v37 = vcombine.high %v1333_v3, %v1349_v6  ;;  %v1359_v42 = vcombine.low %v1340_v5, %v1356_v9  ;;  %v1360_v15 = vcombine.high %v1340_v5, %v1356_v9  ;;  %v4080_v5 = vpop.permute.xlu0 %475 }
 0x1d1   :  { %v1597_v43 = vcombine.low %v1572_v10, %v1580_v12  ;;  %v1598_v4 = vcombine.high %v1572_v10, %v1580_v12  ;;  %v1613_v30 = vcombine.low %v1588_v41, %v1596_v13  ;;  %v1614_v7 = vcombine.high %v1588_v41, %v1596_v13 }
 0x1d2   :  { %v3329_v8 = vpack.c.bf16 %v1357_v38, %v1357_v38  ;;  %v3337_v39 = vpack.c.bf16 %v1358_v37, %v1358_v37  ;;  %v3345_v63 = vpack.c.bf16 %v1359_v42, %v1359_v42  ;;  %v3353_v36 = vpack.c.bf16 %v1360_v15, %v1360_v15 }
 0x1d3   :  { %v1605_v40 = vrot.slane %v1597_v43, %v3845_v11  ;;  %v1612_v31 = vrot.slane %v1598_v4, %v3845_v11  ;;  %v1621_v45 = vrot.slane %v1613_v30, %v3845_v11  ;;  %v1628_v46 = vrot.slane %v1614_v7, %v3845_v11 }
 0x1d4   :  { %1765 = vst.msk [vmem:[%s4671_s10 + $0xc] sm:$0xf] %vm1761_vm2, %v3329_v8  ;;  %1773 = vst.msk [vmem:[%s4671_s10 + $0x2c] sm:$0xf] %vm1761_vm2, %v3337_v39  ;;  %v553_v49 = vrot.slane %v545_v32, %v3839_v47  ;;  %v560_v50 = vrot.slane %v546_v55, %v3839_v47  ;;  %v613_v16 = vcombine.low %v3743_v20, %v3959_v21 }
 0x1d5   :  { %1781 = vst.msk [vmem:[%s4671_s10 + $0x4c] sm:$0xf] %vm1761_vm2, %v3345_v63  ;;  %1789 = vst.msk [vmem:[%s4671_s10 + $0x6c] sm:$0xf] %vm1761_vm2, %v3353_v36  ;;  %v614_v18 = vcombine.high %v3743_v20, %v3959_v21  ;;  %v1629_v53 = vcombine.low %v1605_v40, %v1621_v45  ;;  %v1630_v56 = vcombine.high %v1605_v40, %v1621_v45  ;;  %v532_v21 = vpop.permute.xlu1 %531 }
 0x1d6   :  { %v1631_v57 = vcombine.low %v1612_v31, %v1628_v46  ;;  %v1632_v33 = vcombine.high %v1612_v31, %v1628_v46  ;;  %v4043_v60 = vrot.slane %v613_v16, %v3839_v47  ;;  %v817_v32 = vcombine.low %v3731_v17, %v3988_v35 }
 0x1d7   :  { %v4046_v34 = vrot.slane %v614_v18, %v3839_v47  ;;  %v818_v55 = vcombine.high %v3731_v17, %v3988_v35  ;;  %v3333_v2 = vpack.c.bf16 %v1629_v53, %v1629_v53  ;;  %v3341_v54 = vpack.c.bf16 %v1630_v56, %v1630_v56 }
 0x1d8   :  { %v3349_v61 = vpack.c.bf16 %v1631_v57, %v1631_v57  ;;  %v3357_v20 = vpack.c.bf16 %v1632_v33, %v1632_v33  ;;  %v825_v52 = vrot.slane %v817_v32, %v3839_v47  ;;  %v885_v0 = vcombine.low %v3737_v19, %v4002_v58 }
 0x1d9   :  { %v832_v62 = vrot.slane %v818_v55, %v3839_v47  ;;  %v886_v3 = vcombine.high %v3737_v19, %v4002_v58  ;;  %1769 = vst.msk [vmem:[%s4671_s10 + $0x1c] sm:$0xf] %vm1761_vm2, %v3333_v2  ;;  %1777 = vst.msk [vmem:[%s4671_s10 + $0x3c] sm:$0xf] %vm1761_vm2, %v3341_v54  ;;  %v561_v17 = vcombine.low %v3895_v44, %v4004_v59 }
 0x1da   :  { %1785 = vst.msk [vmem:[%s4671_s10 + $0x5c] sm:$0xf] %vm1761_vm2, %v3349_v61  ;;  %1793 = vst.msk [vmem:[%s4671_s10 + $0x7c] sm:$0xf] %vm1761_vm2, %v3357_v20  ;;  %v562_v19 = vcombine.high %v3895_v44, %v4004_v59  ;;  %v833_v35 = vcombine.low %v3907_v14, %v530_v48  ;;  %v834_v58 = vcombine.high %v3907_v14, %v530_v48  ;;  %v4116_v20 = vpop.permute.xlu0 %1806 }
 0x1db   :  { %v4083_v6 = vrot.slane %v885_v0, %v3839_v47  ;;  %v4086_v9 = vrot.slane %v886_v3, %v3839_v47  ;;  %v901_v10 = vcombine.low %v3918_v51, %v532_v21  ;;  %v902_v12 = vcombine.high %v3918_v51, %v532_v21 }
 0x1dc   :  { %v569_v41 = vrot.slane %v561_v17, %v3839_v47  ;;  %v576_v44 = vrot.slane %v562_v19, %v3839_v47  ;;  %v841_v59 = vrot.slane %v833_v35, %v3839_v47  ;;  %v848_v14 = vrot.slane %v834_v58, %v3839_v47  ;;  %v4122_v58 = vpop.permute.xlu1 %1808 }
 0x1dd   :  { %v4095_v13 = vrot.slane %v901_v10, %v3839_v47  ;;  %v4098_v38 = vrot.slane %v902_v12, %v3839_v47  ;;  %v629_v37 = vcombine.low %v4080_v5, %v4014_v1  ;;  %v630_v51 = vcombine.high %v4080_v5, %v4014_v1 }
 0x1de   :  { %v577_v42 = vcombine.low %v553_v49, %v569_v41  ;;  %v578_v15 = vcombine.high %v553_v49, %v569_v41  ;;  %v593_v43 = vcombine.low %v560_v50, %v576_v44  ;;  %v594_v4 = vcombine.high %v560_v50, %v576_v44 }
 0x1df   :  { %v849_v30 = vcombine.low %v825_v52, %v841_v59  ;;  %v850_v7 = vcombine.high %v825_v52, %v841_v59  ;;  %v865_v8 = vcombine.low %v832_v62, %v848_v14  ;;  %v866_v39 = vcombine.high %v832_v62, %v848_v14 }
 0x1e0   :  { %v585_v63 = vrot.slane %v577_v42, %v3845_v11  ;;  %v592_v36 = vrot.slane %v578_v15, %v3845_v11  ;;  %v601_v40 = vrot.slane %v593_v43, %v3845_v11  ;;  %v608_v31 = vrot.slane %v594_v4, %v3845_v11 }
 0x1e1   :  { %v857_v45 = vrot.slane %v849_v30, %v3845_v11  ;;  %v864_v46 = vrot.slane %v850_v7, %v3845_v11  ;;  %v873_v48 = vrot.slane %v865_v8, %v3845_v11  ;;  %v880_v49 = vrot.slane %v866_v39, %v3845_v11 }
 0x1e2   :  { %v1089_v50 = vcombine.low %v585_v63, %v592_v36  ;;  %v3222_v16 = vcombine.high %v585_v63, %v592_v36  ;;  %v1105_v18 = vcombine.low %v601_v40, %v608_v31  ;;  %v3223_v53 = vcombine.high %v601_v40, %v608_v31  ;;  %v4132_v40 = vpop.permute.xlu0 %1830 }
 0x1e3   :  { %v1361_v56 = vcombine.low %v857_v45, %v864_v46  ;;  %v3230_v57 = vcombine.high %v857_v45, %v864_v46  ;;  %v1377_v33 = vcombine.low %v873_v48, %v880_v49  ;;  %v3231_v32 = vcombine.high %v873_v48, %v880_v49 }
 0x1e4   :  { %v1096_v55 = vrot.slane %v1089_v50, %v3839_v47  ;;  %v1104_v2 = vrot.slane %v3222_v16, %v3839_v47  ;;  %v1112_v54 = vrot.slane %v1105_v18, %v3839_v47  ;;  %v1120_v61 = vrot.slane %v3223_v53, %v3839_v47  ;;  %v4134_v53 = vpop.permute.xlu1 %1832 }
 0x1e5   :  { %v1368_v21 = vrot.slane %v1361_v56, %v3839_v47  ;;  %v1376_v52 = vrot.slane %v3230_v57, %v3839_v47  ;;  %v1384_v62 = vrot.slane %v1377_v33, %v3839_v47  ;;  %v1392_v0 = vrot.slane %v3231_v32, %v3839_v47 }
 0x1e6   :  { %v1121_v3 = vcombine.low %v1096_v55, %v1104_v2  ;;  %v1122_v17 = vcombine.high %v1096_v55, %v1104_v2  ;;  %v1137_v19 = vcombine.low %v1112_v54, %v1120_v61  ;;  %v1138_v35 = vcombine.high %v1112_v54, %v1120_v61 }
 0x1e7   :  { %v1393_v10 = vcombine.low %v1368_v21, %v1376_v52  ;;  %v1394_v12 = vcombine.high %v1368_v21, %v1376_v52  ;;  %v1409_v41 = vcombine.low %v1384_v62, %v1392_v0  ;;  %v1410_v44 = vcombine.high %v1384_v62, %v1392_v0 }
 0x1e8   :  { %v1129_v59 = vrot.slane %v1121_v3, %v3845_v11  ;;  %v1136_v14 = vrot.slane %v1122_v17, %v3845_v11  ;;  %v1145_v42 = vrot.slane %v1137_v19, %v3845_v11  ;;  %v1152_v15 = vrot.slane %v1138_v35, %v3845_v11 }
 0x1e9   :  { %v1401_v43 = vrot.slane %v1393_v10, %v3845_v11  ;;  %v1408_v4 = vrot.slane %v1394_v12, %v3845_v11  ;;  %v1417_v30 = vrot.slane %v1409_v41, %v3845_v11  ;;  %v1424_v7 = vrot.slane %v1410_v44, %v3845_v11  ;;  %v4198_v12 = vpop.permute.xlu1 %1856 }
 0x1ea   :  { %v1153_v8 = vcombine.low %v1129_v59, %v1145_v42  ;;  %v1154_v39 = vcombine.high %v1129_v59, %v1145_v42  ;;  %v1155_v63 = vcombine.low %v1136_v14, %v1152_v15  ;;  %v1156_v36 = vcombine.high %v1136_v14, %v1152_v15 }
 0x1eb   :  { %v1425_v31 = vcombine.low %v1401_v43, %v1417_v30  ;;  %v1426_v45 = vcombine.high %v1401_v43, %v1417_v30  ;;  %v1427_v46 = vcombine.low %v1408_v4, %v1424_v7  ;;  %v1428_v48 = vcombine.high %v1408_v4, %v1424_v7 }
 0x1ec   :  { %v3326_v49 = vpack.c.bf16 %v1153_v8, %v1153_v8  ;;  %v3334_v50 = vpack.c.bf16 %v1154_v39, %v1154_v39  ;;  %v3342_v16 = vpack.c.bf16 %v1155_v63, %v1155_v63  ;;  %v3350_v18 = vpack.c.bf16 %v1156_v36, %v1156_v36 }
 0x1ed   :  { %v3330_v56 = vpack.c.bf16 %v1425_v31, %v1425_v31  ;;  %v3338_v57 = vpack.c.bf16 %v1426_v45, %v1426_v45  ;;  %v3346_v33 = vpack.c.bf16 %v1427_v46, %v1427_v46  ;;  %v3354_v32 = vpack.c.bf16 %v1428_v48, %v1428_v48 }
 0x1ee   :  { %1762 = vst.msk [vmem:[%s4671_s10] sm:$0xf] %vm1761_vm2, %v3326_v49  ;;  %1770 = vst.msk [vmem:[%s4671_s10 + $0x20] sm:$0xf] %vm1761_vm2, %v3334_v50  ;;  %v917_v55 = vcombine.low %v4083_v6, %v4095_v13  ;;  %v918_v2 = vcombine.high %v4083_v6, %v4095_v13  ;;  %v933_v54 = vcombine.low %v4086_v9, %v4098_v38 }
 0x1ef   :  { %1778 = vst.msk [vmem:[%s4671_s10 + $0x40] sm:$0xf] %vm1761_vm2, %v3342_v16  ;;  %1786 = vst.msk [vmem:[%s4671_s10 + $0x60] sm:$0xf] %vm1761_vm2, %v3350_v18  ;;  %v934_v61 = vcombine.high %v4086_v9, %v4098_v38  ;;  %v637_v6 = vrot.slane %v629_v37, %v3839_v47  ;;  %v644_v9 = vrot.slane %v630_v51, %v3839_v47  ;;  %v4192_v37 = vpop.permute.xlu0 %1854 }
 0x1f0   :  { %1766 = vst.msk [vmem:[%s4671_s10 + $0x10] sm:$0xf] %vm1761_vm2, %v3330_v56  ;;  %1774 = vst.msk [vmem:[%s4671_s10 + $0x30] sm:$0xf] %vm1761_vm2, %v3338_v57  ;;  %v2078_v13 = vcombine.low %v3760_v22, %v4134_v53  ;;  %v2079_v38 = vcombine.high %v3760_v22, %v4134_v53  ;;  %v925_v21 = vrot.slane %v917_v55, %v3845_v11  ;;  %v4218_v57 = vpop.permute.xlu1 %1804 }
 0x1f1   :  { %1782 = vst.msk [vmem:[%s4671_s10 + $0x50] sm:$0xf] %vm1761_vm2, %v3346_v33  ;;  %1790 = vst.msk [vmem:[%s4671_s10 + $0x70] sm:$0xf] %vm1761_vm2, %v3354_v32  ;;  %v932_v52 = vrot.slane %v918_v2, %v3845_v11  ;;  %v941_v62 = vrot.slane %v933_v54, %v3845_v11  ;;  %v948_v0 = vrot.slane %v934_v61, %v3845_v11 }
 0x1f2   :  { %v645_v3 = vcombine.low %v4043_v60, %v637_v6  ;;  %v646_v1 = vcombine.high %v4043_v60, %v637_v6  ;;  %v661_v5 = vcombine.low %v4046_v34, %v644_v9  ;;  %v662_v51 = vcombine.high %v4046_v34, %v644_v9 }
 0x1f3   :  { %v1429_v17 = vcombine.low %v925_v21, %v932_v52  ;;  %v3232_v19 = vcombine.high %v925_v21, %v932_v52  ;;  %v1445_v35 = vcombine.low %v941_v62, %v948_v0  ;;  %v3233_v10 = vcombine.high %v941_v62, %v948_v0  ;;  %v4208_v31 = vpop.permute.xlu0 %1802 }
 0x1f4   :  { %v653_v41 = vrot.slane %v645_v3, %v3845_v11  ;;  %v660_v44 = vrot.slane %v646_v1, %v3845_v11  ;;  %v669_v59 = vrot.slane %v661_v5, %v3845_v11  ;;  %v676_v14 = vrot.slane %v662_v51, %v3845_v11 }
 0x1f5   :  { %v1436_v60 = vrot.slane %v1429_v17, %v3839_v47  ;;  %v1444_v42 = vrot.slane %v3232_v19, %v3839_v47  ;;  %v1452_v34 = vrot.slane %v1445_v35, %v3839_v47  ;;  %v1460_v15 = vrot.slane %v3233_v10, %v3839_v47 }
 0x1f6   :  { %v1157_v43 = vcombine.low %v653_v41, %v660_v44  ;;  %v3224_v4 = vcombine.high %v653_v41, %v660_v44  ;;  %v1173_v30 = vcombine.low %v669_v59, %v676_v14  ;;  %v3225_v7 = vcombine.high %v669_v59, %v676_v14 }
 0x1f7   :  { %v1461_v8 = vcombine.low %v1436_v60, %v1444_v42  ;;  %v1462_v39 = vcombine.high %v1436_v60, %v1444_v42  ;;  %v1477_v63 = vcombine.low %v1452_v34, %v1460_v15  ;;  %v1478_v36 = vcombine.high %v1452_v34, %v1460_v15  ;;  %v4224_v17 = vpop.permute.xlu0 %1826  ;;  %v4250_v60 = vpop.permute.xlu1 %1828 }
 0x1f8   :  { %v1164_v45 = vrot.slane %v1157_v43, %v3839_v47  ;;  %v1172_v46 = vrot.slane %v3224_v4, %v3839_v47  ;;  %v1180_v48 = vrot.slane %v1173_v30, %v3839_v47  ;;  %v1188_v49 = vrot.slane %v3225_v7, %v3839_v47 }
 0x1f9   :  { %v1469_v50 = vrot.slane %v1461_v8, %v3845_v11  ;;  %v1476_v16 = vrot.slane %v1462_v39, %v3845_v11  ;;  %v1485_v18 = vrot.slane %v1477_v63, %v3845_v11  ;;  %v1492_v56 = vrot.slane %v1478_v36, %v3845_v11 }
 0x1fa   :  { %v1189_v33 = vcombine.low %v1164_v45, %v1172_v46  ;;  %v1190_v32 = vcombine.high %v1164_v45, %v1172_v46  ;;  %v1205_v55 = vcombine.low %v1180_v48, %v1188_v49  ;;  %v1206_v2 = vcombine.high %v1180_v48, %v1188_v49 }
 0x1fb   :  { %v1493_v54 = vcombine.low %v1469_v50, %v1485_v18  ;;  %v1494_v61 = vcombine.high %v1469_v50, %v1485_v18  ;;  %v1495_v6 = vcombine.low %v1476_v16, %v1492_v56  ;;  %v1496_v9 = vcombine.high %v1476_v16, %v1492_v56  ;;  %v4290_v39 = vpop.permute.xlu0 %1850 }
 0x1fc   :  { %v1197_v21 = vrot.slane %v1189_v33, %v3845_v11  ;;  %v1204_v52 = vrot.slane %v1190_v32, %v3845_v11  ;;  %v1213_v62 = vrot.slane %v1205_v55, %v3845_v11  ;;  %v1220_v0 = vrot.slane %v1206_v2, %v3845_v11 }
 0x1fd   :  { %v3331_v3 = vpack.c.bf16 %v1493_v54, %v1493_v54  ;;  %v3339_v1 = vpack.c.bf16 %v1494_v61, %v1494_v61  ;;  %v3347_v5 = vpack.c.bf16 %v1495_v6, %v1495_v6  ;;  %v3355_v51 = vpack.c.bf16 %v1496_v9, %v1496_v9  ;;  %v4303_v54 = vpop.permute.xlu1 %1852 }
 0x1fe   :  { %v1221_v19 = vcombine.low %v1197_v21, %v1213_v62  ;;  %v1222_v35 = vcombine.high %v1197_v21, %v1213_v62  ;;  %v1223_v10 = vcombine.low %v1204_v52, %v1220_v0  ;;  %v1224_v41 = vcombine.high %v1204_v52, %v1220_v0 }
 0x1ff   :  { %1767 = vst.msk [vmem:[%s4671_s10 + $0x14] sm:$0xf] %vm1761_vm2, %v3331_v3  ;;  %1775 = vst.msk [vmem:[%s4671_s10 + $0x34] sm:$0xf] %vm1761_vm2, %v3339_v1  ;;  %v2086_v44 = vrot.slane %v2078_v13, %v3839_v47  ;;  %v2010_v59 = vcombine.low %v3764_v23, %v4132_v40  ;;  %v2011_v14 = vcombine.high %v3764_v23, %v4132_v40  ;;  %v4309_v1 = vpop.permute.xlu0 %1814 }
 0x200   :  { %1783 = vst.msk [vmem:[%s4671_s10 + $0x54] sm:$0xf] %vm1761_vm2, %v3347_v5  ;;  %1791 = vst.msk [vmem:[%s4671_s10 + $0x74] sm:$0xf] %vm1761_vm2, %v3355_v51  ;;  %v3327_v42 = vpack.c.bf16 %v1221_v19, %v1221_v19  ;;  %v3335_v34 = vpack.c.bf16 %v1222_v35, %v1222_v35  ;;  %v3343_v15 = vpack.c.bf16 %v1223_v10, %v1223_v10 }
 0x201   :  { %v3351_v43 = vpack.c.bf16 %v1224_v41, %v1224_v41  ;;  %v2093_v4 = vrot.slane %v2079_v38, %v3839_v47  ;;  %v2018_v30 = vrot.slane %v2010_v59, %v3839_v47  ;;  %v2094_v13 = vcombine.low %v4122_v58, %v4198_v12 }
 0x202   :  { %v2095_v7 = vcombine.high %v4122_v58, %v4198_v12  ;;  %1763 = vst.msk [vmem:[%s4671_s10 + $0x4] sm:$0xf] %vm1761_vm2, %v3327_v42  ;;  %1771 = vst.msk [vmem:[%s4671_s10 + $0x24] sm:$0xf] %vm1761_vm2, %v3335_v34  ;;  %v2025_v22 = vrot.slane %v2011_v14, %v3839_v47  ;;  %v2026_v23 = vcombine.low %v4116_v20, %v4192_v37 }
 0x203   :  { %1779 = vst.msk [vmem:[%s4671_s10 + $0x44] sm:$0xf] %vm1761_vm2, %v3343_v15  ;;  %1787 = vst.msk [vmem:[%s4671_s10 + $0x64] sm:$0xf] %vm1761_vm2, %v3351_v43  ;;  %v2027_v58 = vcombine.high %v4116_v20, %v4192_v37  ;;  %v1942_v40 = vcombine.low %v3780_v24, %v4250_v60  ;;  %v2102_v53 = vrot.slane %v2094_v13, %v3839_v47 }
 0x204   :  { %v2109_v38 = vrot.slane %v2095_v7, %v3839_v47  ;;  %v1943_v12 = vcombine.high %v3780_v24, %v4250_v60  ;;  %v1874_v8 = vcombine.low %v3782_v25, %v4224_v17  ;;  %v2034_v63 = vrot.slane %v2026_v23, %v3839_v47  ;;  %v4319_v7 = vpop.permute.xlu1 %1816 }
 0x205   :  { %v2041_v36 = vrot.slane %v2027_v58, %v3839_v47  ;;  %v4295_v20 = vrot.slane %v1942_v40, %v3839_v47  ;;  %v1875_v37 = vcombine.high %v3782_v25, %v4224_v17  ;;  %v2110_v45 = vcombine.low %v2086_v44, %v2102_v53 }
 0x206   :  { %v2111_v46 = vcombine.high %v2086_v44, %v2102_v53  ;;  %v2126_v48 = vcombine.low %v2093_v4, %v2109_v38  ;;  %v2127_v49 = vcombine.high %v2093_v4, %v2109_v38  ;;  %v2042_v50 = vcombine.low %v2018_v30, %v2034_v63 }
 0x207   :  { %v2043_v16 = vcombine.high %v2018_v30, %v2034_v63  ;;  %v2058_v18 = vcombine.low %v2025_v22, %v2041_v36  ;;  %v2059_v56 = vcombine.high %v2025_v22, %v2041_v36  ;;  %v2118_v33 = vrot.slane %v2110_v45, %v3845_v11  ;;  %v4325_v45 = vpop.permute.xlu0 %1838 }
 0x208   :  { %v2125_v32 = vrot.slane %v2111_v46, %v3845_v11  ;;  %v2134_v55 = vrot.slane %v2126_v48, %v3845_v11  ;;  %v2141_v2 = vrot.slane %v2127_v49, %v3845_v11  ;;  %v2050_v61 = vrot.slane %v2042_v50, %v3845_v11 }
 0x209   :  { %v2057_v6 = vrot.slane %v2043_v16, %v3845_v11  ;;  %v2066_v9 = vrot.slane %v2058_v18, %v3845_v11  ;;  %v2073_v21 = vrot.slane %v2059_v56, %v3845_v11  ;;  %v1889_v24 = vrot.slane %v1875_v37, %v3839_v47 }
 0x20a   :  { %v2622_v52 = vcombine.low %v2118_v33, %v2125_v32  ;;  %v3276_v62 = vcombine.high %v2118_v33, %v2125_v32  ;;  %v2638_v0 = vcombine.low %v2134_v55, %v2141_v2  ;;  %v3277_v3 = vcombine.high %v2134_v55, %v2141_v2 }
 0x20b   :  { %v2554_v5 = vcombine.low %v2050_v61, %v2057_v6  ;;  %v3274_v51 = vcombine.high %v2050_v61, %v2057_v6  ;;  %v2570_v19 = vcombine.low %v2066_v9, %v2073_v21  ;;  %v3275_v35 = vcombine.high %v2066_v9, %v2073_v21 }
 0x20c   :  { %v2629_v10 = vrot.slane %v2622_v52, %v3839_v47  ;;  %v2637_v41 = vrot.slane %v3276_v62, %v3839_v47  ;;  %v2645_v44 = vrot.slane %v2638_v0, %v3839_v47  ;;  %v2653_v59 = vrot.slane %v3277_v3, %v3839_v47  ;;  %v4331_v62 = vpop.permute.xlu1 %1840 }
 0x20d   :  { %v2561_v14 = vrot.slane %v2554_v5, %v3839_v47  ;;  %v2569_v42 = vrot.slane %v3274_v51, %v3839_v47  ;;  %v2577_v34 = vrot.slane %v2570_v19, %v3839_v47  ;;  %v2585_v15 = vrot.slane %v3275_v35, %v3839_v47 }
 0x20e   :  { %v2654_v43 = vcombine.low %v2629_v10, %v2637_v41  ;;  %v2655_v4 = vcombine.high %v2629_v10, %v2637_v41  ;;  %v2670_v30 = vcombine.low %v2645_v44, %v2653_v59  ;;  %v2671_v13 = vcombine.high %v2645_v44, %v2653_v59  ;;  %v4361_v44 = vpop.permute.xlu0 %1862 }
 0x20f   :  { %v2586_v22 = vcombine.low %v2561_v14, %v2569_v42  ;;  %v2587_v23 = vcombine.high %v2561_v14, %v2569_v42  ;;  %v2602_v58 = vcombine.low %v2577_v34, %v2585_v15  ;;  %v2603_v40 = vcombine.high %v2577_v34, %v2585_v15 }
 0x210   :  { %v2662_v53 = vrot.slane %v2654_v43, %v3845_v11  ;;  %v2669_v38 = vrot.slane %v2655_v4, %v3845_v11  ;;  %v2678_v63 = vrot.slane %v2670_v30, %v3845_v11  ;;  %v2685_v36 = vrot.slane %v2671_v13, %v3845_v11 }
 0x211   :  { %v2594_v46 = vrot.slane %v2586_v22, %v3845_v11  ;;  %v2601_v48 = vrot.slane %v2587_v23, %v3845_v11  ;;  %v2610_v49 = vrot.slane %v2602_v58, %v3845_v11  ;;  %v2617_v50 = vrot.slane %v2603_v40, %v3845_v11 }
 0x212   :  { %v2686_v16 = vcombine.low %v2662_v53, %v2678_v63  ;;  %v2687_v18 = vcombine.high %v2662_v53, %v2678_v63  ;;  %v2688_v56 = vcombine.low %v2669_v38, %v2685_v36  ;;  %v2689_v33 = vcombine.high %v2669_v38, %v2685_v36  ;;  %v4408_v53 = vpop.permute.xlu1 %1812  ;;  %v4410_v38 = vpop.permute.xlu0 %1810 }
 0x213   :  { %v2618_v32 = vcombine.low %v2594_v46, %v2610_v49  ;;  %v2619_v55 = vcombine.high %v2594_v46, %v2610_v49  ;;  %v2620_v2 = vcombine.low %v2601_v48, %v2617_v50  ;;  %v2621_v61 = vcombine.high %v2601_v48, %v2617_v50 }
 0x214   :  { %v3361_v6 = vpack.c.bf16 %v2686_v16, %v2686_v16  ;;  %v3369_v9 = vpack.c.bf16 %v2687_v18, %v2687_v18  ;;  %v3377_v21 = vpack.c.bf16 %v2688_v56, %v2688_v56  ;;  %v3385_v52 = vpack.c.bf16 %v2689_v33, %v2689_v33 }
 0x215   :  { %v3360_v0 = vpack.c.bf16 %v2618_v32, %v2618_v32  ;;  %v3368_v3 = vpack.c.bf16 %v2619_v55, %v2619_v55  ;;  %v3376_v5 = vpack.c.bf16 %v2620_v2, %v2620_v2  ;;  %v3384_v51 = vpack.c.bf16 %v2621_v61, %v2621_v61 }
 0x216   :  { %3093 = vst.msk [vmem:[%s4673_s12 + $0xc] sm:$0xf] %vm1761_vm2, %v3361_v6  ;;  %3101 = vst.msk [vmem:[%s4673_s12 + $0x2c] sm:$0xf] %vm1761_vm2, %v3369_v9  ;;  %v1957_v19 = vrot.slane %v1943_v12, %v3839_v47  ;;  %v1882_v35 = vrot.slane %v1874_v8, %v3839_v47  ;;  %v1958_v10 = vcombine.low %v4218_v57, %v4303_v54 }
 0x217   :  { %3109 = vst.msk [vmem:[%s4673_s12 + $0x4c] sm:$0xf] %vm1761_vm2, %v3377_v21  ;;  %3117 = vst.msk [vmem:[%s4673_s12 + $0x6c] sm:$0xf] %vm1761_vm2, %v3385_v52  ;;  %v1959_v41 = vcombine.high %v4218_v57, %v4303_v54  ;;  %v1890_v57 = vcombine.low %v4208_v31, %v4290_v39  ;;  %v1891_v60 = vcombine.high %v4208_v31, %v4290_v39 }
 0x218   :  { %3092 = vst.msk [vmem:[%s4673_s12 + $0x8] sm:$0xf] %vm1761_vm2, %v3360_v0  ;;  %3100 = vst.msk [vmem:[%s4673_s12 + $0x28] sm:$0xf] %vm1761_vm2, %v3368_v3  ;;  %v2350_v12 = vcombine.low %v3792_v26, %v4331_v62  ;;  %v1966_v8 = vrot.slane %v1958_v10, %v3839_v47  ;;  %v2351_v59 = vcombine.high %v3792_v26, %v4331_v62  ;;  %v4424_v10 = vpop.permute.xlu0 %1834 }
 0x219   :  { %3108 = vst.msk [vmem:[%s4673_s12 + $0x48] sm:$0xf] %vm1761_vm2, %v3376_v5  ;;  %3116 = vst.msk [vmem:[%s4673_s12 + $0x68] sm:$0xf] %vm1761_vm2, %v3384_v51  ;;  %v1973_v54 = vrot.slane %v1959_v41, %v3839_v47  ;;  %v2282_v25 = vcombine.low %v3796_v27, %v4325_v45  ;;  %v1898_v17 = vrot.slane %v1890_v57, %v3839_v47 }
 0x21a   :  { %v1905_v37 = vrot.slane %v1891_v60, %v3839_v47  ;;  %v4398_v14 = vrot.slane %v2350_v12, %v3839_v47  ;;  %v2283_v31 = vcombine.high %v3796_v27, %v4325_v45  ;;  %v1974_v39 = vcombine.low %v4295_v20, %v1966_v8 }
 0x21b   :  { %v1975_v42 = vcombine.high %v4295_v20, %v1966_v8  ;;  %v1990_v34 = vcombine.low %v1957_v19, %v1973_v54  ;;  %v1991_v15 = vcombine.high %v1957_v19, %v1973_v54  ;;  %v1906_v43 = vcombine.low %v1882_v35, %v1898_v17 }
 0x21c   :  { %v1907_v4 = vcombine.high %v1882_v35, %v1898_v17  ;;  %v1922_v30 = vcombine.low %v1889_v24, %v1905_v37  ;;  %v1923_v13 = vcombine.high %v1889_v24, %v1905_v37  ;;  %v1982_v22 = vrot.slane %v1974_v39, %v3845_v11  ;;  %v1837_v35 = vpop.permute.xlu1 %1836 }
 0x21d   :  { %v1989_v23 = vrot.slane %v1975_v42, %v3845_v11  ;;  %v1998_v58 = vrot.slane %v1990_v34, %v3845_v11  ;;  %v2005_v40 = vrot.slane %v1991_v15, %v3845_v11  ;;  %v1914_v20 = vrot.slane %v1906_v43, %v3845_v11 }
 0x21e   :  { %v1921_v63 = vrot.slane %v1907_v4, %v3845_v11  ;;  %v1930_v36 = vrot.slane %v1922_v30, %v3845_v11  ;;  %v1937_v46 = vrot.slane %v1923_v13, %v3845_v11  ;;  %v2214_v27 = vcombine.low %v3808_v28, %v1837_v35 }
 0x21f   :  { %v2486_v48 = vcombine.low %v1982_v22, %v1989_v23  ;;  %v3272_v49 = vcombine.high %v1982_v22, %v1989_v23  ;;  %v2502_v50 = vcombine.low %v1998_v58, %v2005_v40  ;;  %v3273_v16 = vcombine.high %v1998_v58, %v2005_v40 }
 0x220   :  { %v2418_v18 = vcombine.low %v1914_v20, %v1921_v63  ;;  %v3270_v56 = vcombine.high %v1914_v20, %v1921_v63  ;;  %v2434_v33 = vcombine.low %v1930_v36, %v1937_v46  ;;  %v3271_v32 = vcombine.high %v1930_v36, %v1937_v46  ;;  %v1861_v46 = vpop.permute.xlu1 %1860 }
 0x221   :  { %v2493_v55 = vrot.slane %v2486_v48, %v3839_v47  ;;  %v2501_v2 = vrot.slane %v3272_v49, %v3839_v47  ;;  %v2509_v61 = vrot.slane %v2502_v50, %v3839_v47  ;;  %v2517_v6 = vrot.slane %v3273_v16, %v3839_v47  ;;  %v4434_v48 = vpop.permute.xlu0 %1858 }
 0x222   :  { %v2425_v9 = vrot.slane %v2418_v18, %v3839_v47  ;;  %v2433_v21 = vrot.slane %v3270_v56, %v3839_v47  ;;  %v2441_v52 = vrot.slane %v2434_v33, %v3839_v47  ;;  %v2449_v0 = vrot.slane %v3271_v32, %v3839_v47 }
 0x223   :  { %v2518_v3 = vcombine.low %v2493_v55, %v2501_v2  ;;  %v2519_v5 = vcombine.high %v2493_v55, %v2501_v2  ;;  %v2534_v51 = vcombine.low %v2509_v61, %v2517_v6  ;;  %v2535_v19 = vcombine.high %v2509_v61, %v2517_v6 }
 0x224   :  { %v2450_v41 = vcombine.low %v2425_v9, %v2433_v21  ;;  %v2451_v24 = vcombine.high %v2425_v9, %v2433_v21  ;;  %v2466_v57 = vcombine.low %v2441_v52, %v2449_v0  ;;  %v2467_v60 = vcombine.high %v2441_v52, %v2449_v0 }
 0x225   :  { %v2526_v12 = vrot.slane %v2518_v3, %v3845_v11  ;;  %v2533_v8 = vrot.slane %v2519_v5, %v3845_v11  ;;  %v2542_v54 = vrot.slane %v2534_v51, %v3845_v11  ;;  %v2549_v17 = vrot.slane %v2535_v19, %v3845_v11 }
 0x226   :  { %v2458_v37 = vrot.slane %v2450_v41, %v3845_v11  ;;  %v2465_v39 = vrot.slane %v2451_v24, %v3845_v11  ;;  %v2474_v42 = vrot.slane %v2466_v57, %v3845_v11  ;;  %v2481_v34 = vrot.slane %v2467_v60, %v3845_v11 }
 0x227   :  { %v2550_v15 = vcombine.low %v2526_v12, %v2542_v54  ;;  %v2551_v43 = vcombine.high %v2526_v12, %v2542_v54  ;;  %v2552_v4 = vcombine.low %v2533_v8, %v2549_v17  ;;  %v2553_v30 = vcombine.high %v2533_v8, %v2549_v17 }
 0x228   :  { %v2482_v13 = vcombine.low %v2458_v37, %v2474_v42  ;;  %v2483_v22 = vcombine.high %v2458_v37, %v2474_v42  ;;  %v2484_v23 = vcombine.low %v2465_v39, %v2481_v34  ;;  %v2485_v58 = vcombine.high %v2465_v39, %v2481_v34  ;;  %v4490_v6 = vpop.trf.xlu0 }
 0x229   :  { %v3359_v40 = vpack.c.bf16 %v2550_v15, %v2550_v15  ;;  %v3367_v20 = vpack.c.bf16 %v2551_v43, %v2551_v43  ;;  %v3375_v63 = vpack.c.bf16 %v2552_v4, %v2552_v4  ;;  %v3383_v36 = vpack.c.bf16 %v2553_v30, %v2553_v30 }
 0x22a   :  { %v3358_v49 = vpack.c.bf16 %v2482_v13, %v2482_v13  ;;  %v3366_v50 = vpack.c.bf16 %v2483_v22, %v2483_v22  ;;  %v3374_v16 = vpack.c.bf16 %v2484_v23, %v2484_v23  ;;  %v3382_v18 = vpack.c.bf16 %v2485_v58, %v2485_v58 }
 0x22b   :  { %3091 = vst.msk [vmem:[%s4673_s12 + $0x4] sm:$0xf] %vm1761_vm2, %v3359_v40  ;;  %3099 = vst.msk [vmem:[%s4673_s12 + $0x24] sm:$0xf] %vm1761_vm2, %v3367_v20  ;;  %v2290_v56 = vrot.slane %v2282_v25, %v3839_v47  ;;  %v2297_v33 = vrot.slane %v2283_v31, %v3839_v47  ;;  %v2298_v32 = vcombine.low %v4309_v1, %v4361_v44 }
 0x22c   :  { %3107 = vst.msk [vmem:[%s4673_s12 + $0x44] sm:$0xf] %vm1761_vm2, %v3375_v63  ;;  %3115 = vst.msk [vmem:[%s4673_s12 + $0x64] sm:$0xf] %vm1761_vm2, %v3383_v36  ;;  %v2299_v55 = vcombine.high %v4309_v1, %v4361_v44  ;;  %v2215_v1 = vcombine.high %v3808_v28, %v1837_v35  ;;  %v2230_v45 = vcombine.low %v4408_v53, %v1861_v46  ;;  %v4504_v43 = vpop.trf.xlu0 }
 0x22d   :  { %3090 = vst.msk [vmem:[%s4673_s12] sm:$0xf] %vm1761_vm2, %v3358_v49  ;;  %3098 = vst.msk [vmem:[%s4673_s12 + $0x20] sm:$0xf] %vm1761_vm2, %v3366_v50  ;;  %v2231_v44 = vcombine.high %v4408_v53, %v1861_v46  ;;  %v2306_v25 = vrot.slane %v2298_v32, %v3839_v47  ;;  %v2146_v2 = vcombine.low %v3814_v29, %v4424_v10 }
 0x22e   :  { %3106 = vst.msk [vmem:[%s4673_s12 + $0x40] sm:$0xf] %vm1761_vm2, %v3374_v16  ;;  %3114 = vst.msk [vmem:[%s4673_s12 + $0x60] sm:$0xf] %vm1761_vm2, %v3382_v18  ;;  %v2313_v31 = vrot.slane %v2299_v55, %v3839_v47  ;;  %v2147_v61 = vcombine.high %v3814_v29, %v4424_v10  ;;  %v2222_v9 = vrot.slane %v2214_v27, %v3839_v47 }
 0x22f   :  { %v2229_v28 = vrot.slane %v2215_v1, %v3839_v47  ;;  %v2238_v21 = vrot.slane %v2230_v45, %v3839_v47  ;;  %v2245_v53 = vrot.slane %v2231_v44, %v3839_v47  ;;  %v2314_v52 = vcombine.low %v2290_v56, %v2306_v25 }
 0x230   :  { %v2315_v0 = vcombine.high %v2290_v56, %v2306_v25  ;;  %v2330_v3 = vcombine.low %v2297_v33, %v2313_v31  ;;  %v2331_v5 = vcombine.high %v2297_v33, %v2313_v31  ;;  %v3140_v31 = vpop.trf.xlu0  ;;  %v2154_v26 = vrot.slane %v2146_v2, %v3839_v47 }
 0x231   :  { %v2246_v51 = vcombine.low %v2222_v9, %v2238_v21  ;;  %v2247_v19 = vcombine.high %v2222_v9, %v2238_v21  ;;  %v2262_v35 = vcombine.low %v2229_v28, %v2245_v53  ;;  %v2263_v41 = vcombine.high %v2229_v28, %v2245_v53 }
 0x232   :  { %v2322_v24 = vrot.slane %v2314_v52, %v3845_v11  ;;  %v2329_v57 = vrot.slane %v2315_v0, %v3845_v11  ;;  %v2338_v60 = vrot.slane %v2330_v3, %v3845_v11  ;;  %v2345_v12 = vrot.slane %v2331_v5, %v3845_v11 }
 0x233   :  { %v2254_v8 = vrot.slane %v2246_v51, %v3845_v11  ;;  %v2261_v54 = vrot.slane %v2247_v19, %v3845_v11  ;;  %v2270_v17 = vrot.slane %v2262_v35, %v3845_v11  ;;  %v2277_v37 = vrot.slane %v2263_v41, %v3845_v11 }
 0x234   :  { %v2826_v39 = vcombine.low %v2322_v24, %v2329_v57  ;;  %v3282_v42 = vcombine.high %v2322_v24, %v2329_v57  ;;  %v2842_v34 = vcombine.low %v2338_v60, %v2345_v12  ;;  %v3283_v15 = vcombine.high %v2338_v60, %v2345_v12  ;;  %v1865_v24 = vpop.permute.xlu1 %1864 }
 0x235   :  { %v2758_v4 = vcombine.low %v2254_v8, %v2261_v54  ;;  %v3280_v30 = vcombine.high %v2254_v8, %v2261_v54  ;;  %v2774_v13 = vcombine.low %v2270_v17, %v2277_v37  ;;  %v3281_v22 = vcombine.high %v2270_v17, %v2277_v37 }
 0x236   :  { %v2833_v23 = vrot.slane %v2826_v39, %v3839_v47  ;;  %v2841_v58 = vrot.slane %v3282_v42, %v3839_v47  ;;  %v2849_v40 = vrot.slane %v2842_v34, %v3839_v47  ;;  %v2857_v20 = vrot.slane %v3283_v15, %v3839_v47  ;;  %v3141_v34 = vpop.trf.xlu0 }
 0x237   :  { %v2765_v63 = vrot.slane %v2758_v4, %v3839_v47  ;;  %v2773_v36 = vrot.slane %v3280_v30, %v3839_v47  ;;  %v2781_v46 = vrot.slane %v2774_v13, %v3839_v47  ;;  %v2789_v49 = vrot.slane %v3281_v22, %v3839_v47 }
 0x238   :  { %v2858_v50 = vcombine.low %v2833_v23, %v2841_v58  ;;  %v2859_v16 = vcombine.high %v2833_v23, %v2841_v58  ;;  %v2874_v18 = vcombine.low %v2849_v40, %v2857_v20  ;;  %v2875_v56 = vcombine.high %v2849_v40, %v2857_v20 }
 0x239   :  { %v2790_v33 = vcombine.low %v2765_v63, %v2773_v36  ;;  %v2791_v32 = vcombine.high %v2765_v63, %v2773_v36  ;;  %v2806_v55 = vcombine.low %v2781_v46, %v2789_v49  ;;  %v2807_v27 = vcombine.high %v2781_v46, %v2789_v49 }
 0x23a   :  { %v2866_v1 = vrot.slane %v2858_v50, %v3845_v11  ;;  %v2873_v45 = vrot.slane %v2859_v16, %v3845_v11  ;;  %v2882_v44 = vrot.slane %v2874_v18, %v3845_v11  ;;  %v2889_v25 = vrot.slane %v2875_v56, %v3845_v11 }
 0x23b   :  { %v2798_v9 = vrot.slane %v2790_v33, %v3845_v11  ;;  %v2805_v28 = vrot.slane %v2791_v32, %v3845_v11  ;;  %v2814_v21 = vrot.slane %v2806_v55, %v3845_v11  ;;  %v2821_v53 = vrot.slane %v2807_v27, %v3845_v11 }
 0x23c   :  { %v2890_v52 = vcombine.low %v2866_v1, %v2882_v44  ;;  %v2891_v0 = vcombine.high %v2866_v1, %v2882_v44  ;;  %v2892_v3 = vcombine.low %v2873_v45, %v2889_v25  ;;  %v2893_v5 = vcombine.high %v2873_v45, %v2889_v25 }
 0x23d   :  { %v2822_v51 = vcombine.low %v2798_v9, %v2814_v21  ;;  %v2823_v19 = vcombine.high %v2798_v9, %v2814_v21  ;;  %v2824_v35 = vcombine.low %v2805_v28, %v2821_v53  ;;  %v2825_v41 = vcombine.high %v2805_v28, %v2821_v53 }
 0x23e   :  { %v3364_v57 = vpack.c.bf16 %v2890_v52, %v2890_v52  ;;  %v3372_v60 = vpack.c.bf16 %v2891_v0, %v2891_v0  ;;  %v3380_v12 = vpack.c.bf16 %v2892_v3, %v2892_v3  ;;  %v3388_v8 = vpack.c.bf16 %v2893_v5, %v2893_v5 }
 0x23f   :  { %v3363_v54 = vpack.c.bf16 %v2822_v51, %v2822_v51  ;;  %v3371_v17 = vpack.c.bf16 %v2823_v19, %v2823_v19  ;;  %v3379_v37 = vpack.c.bf16 %v2824_v35, %v2824_v35  ;;  %v3387_v39 = vpack.c.bf16 %v2825_v41, %v2825_v41 }
 0x240   :  { %v2365_v42 = vrot.slane %v2351_v59, %v3839_v47  ;;  %3096 = vst.msk [vmem:[%s4673_s12 + $0x18] sm:$0xf] %vm1761_vm2, %v3364_v57  ;;  %3104 = vst.msk [vmem:[%s4673_s12 + $0x38] sm:$0xf] %vm1761_vm2, %v3372_v60  ;;  %v2366_v62 = vcombine.low %v4319_v7, %v1865_v24  ;;  %v2367_v59 = vcombine.high %v4319_v7, %v1865_v24 }
 0x241   :  { %3112 = vst.msk [vmem:[%s4673_s12 + $0x58] sm:$0xf] %vm1761_vm2, %v3380_v12  ;;  %3120 = vst.msk [vmem:[%s4673_s12 + $0x78] sm:$0xf] %vm1761_vm2, %v3388_v8  ;;  %v2162_v7 = vcombine.low %v4410_v38, %v4434_v48  ;;  %v2163_v2 = vcombine.high %v4410_v38, %v4434_v48  ;;  %v3154_v15 = vpack.c.bf16 %v4490_v6, %v4490_v6 }
 0x242   :  { %3095 = vst.msk [vmem:[%s4673_s12 + $0x14] sm:$0xf] %vm1761_vm2, %v3363_v54  ;;  %3103 = vst.msk [vmem:[%s4673_s12 + $0x34] sm:$0xf] %vm1761_vm2, %v3371_v17  ;;  %v2374_v4 = vrot.slane %v2366_v62, %v3839_v47  ;;  %v2381_v30 = vrot.slane %v2367_v59, %v3839_v47  ;;  %v3155_v13 = vpack.c.bf16 %v4504_v43, %v4504_v43 }
 0x243   :  { %3111 = vst.msk [vmem:[%s4673_s12 + $0x54] sm:$0xf] %vm1761_vm2, %v3379_v37  ;;  %3119 = vst.msk [vmem:[%s4673_s12 + $0x74] sm:$0xf] %vm1761_vm2, %v3387_v39  ;;  %v3156_v22 = vpack.c.bf16 %v3140_v31, %v3140_v31  ;;  %v2161_v23 = vrot.slane %v2147_v61, %v3839_v47  ;;  %v2170_v58 = vrot.slane %v2162_v7, %v3839_v47 }
 0x244   :  { %v2177_v38 = vrot.slane %v2163_v2, %v3839_v47  ;;  %3159 = vst.msk [vmem:[#allocation2] sm:$0xf] %vm3158_vm3, %v3154_v15  ;;  %v3157_v48 = vpack.c.bf16 %v3141_v34, %v3141_v34  ;;  %v2382_v6 = vcombine.low %v4398_v14, %v2374_v4  ;;  %v2383_v43 = vcombine.high %v4398_v14, %v2374_v4 }
 0x245   :  { %v2398_v40 = vcombine.low %v2365_v42, %v2381_v30  ;;  %v2399_v20 = vcombine.high %v2365_v42, %v2381_v30  ;;  %3160 = vst.msk [vmem:[#allocation2 + $0x4] sm:$0xf] %vm3158_vm3, %v3155_v13  ;;  %3161 = vst.msk [vmem:[#allocation2 + $0x8] sm:$0xf] %vm3158_vm3, %v3156_v22  ;;  %v2178_v29 = vcombine.low %v2154_v26, %v2170_v58 }
 0x246   :  { %v2179_v10 = vcombine.high %v2154_v26, %v2170_v58  ;;  %v2194_v61 = vcombine.low %v2161_v23, %v2177_v38  ;;  %v2195_v63 = vcombine.high %v2161_v23, %v2177_v38  ;;  %3162 = vst.msk [vmem:[#allocation2 + $0xc] sm:$0xf] %vm3158_vm3, %v3157_v48  ;;  %v2390_v36 = vrot.slane %v2382_v6, %v3845_v11 }
 0x247   :  { %v2397_v46 = vrot.slane %v2383_v43, %v3845_v11  ;;  %v2406_v49 = vrot.slane %v2398_v40, %v3845_v11  ;;  %v2413_v14 = vrot.slane %v2399_v20, %v3845_v11 }
 0x248   :  { %3476 = shalt.err (!%p3473_p4)
}
 0x249   :  { %s3477_s13 = scalar_lea.hbm %s4672_s11, 256 }
 0x24a   :  { %p3478_p5 = scmp.ne.s32.totalorder %s4672_s11, %s3477_s13  ;;  %p3481_p6 = scmp.lt.u32.totalorder %s3477_s13, %s4672_s11 }
 0x24c   :  { %p3483_p7 = pnand %p3481_p6, %p3478_p5 }
 0x24e   :  { %3486 = shalt.err (!%p3483_p7)
}
 0x24f   :  { %s3495_s10 = smov 64   ;;  %s3496_s16 = smov 4   ;;  %v2186_v50 = vrot.slane %v2178_v29, %v3845_v11  ;;  %v2193_v16 = vrot.slane %v2179_v10, %v3845_v11  ;;  %v2202_v18 = vrot.slane %v2194_v61, %v3845_v11  ;;  %v2209_v56 = vrot.slane %v2195_v63, %v3845_v11 }
 0x250   :  { %3178 = dma.vmem_to_hbm [thread:$0]  %s4581_s5, 256, %s4672_s11, [#allocation3], %s3495_s10, %s3495_s10, %s3496_s16   ;;  %v2894_v33 = vcombine.low %v2390_v36, %v2397_v46  ;;  %v3284_v32 = vcombine.high %v2390_v36, %v2397_v46  ;;  %v2910_v55 = vcombine.low %v2406_v49, %v2413_v14  ;;  %v3285_v27 = vcombine.high %v2406_v49, %v2413_v14 }
 0x251   :  { %v2690_v1 = vcombine.low %v2186_v50, %v2193_v16  ;;  %v3278_v45 = vcombine.high %v2186_v50, %v2193_v16  ;;  %v2706_v44 = vcombine.low %v2202_v18, %v2209_v56  ;;  %v3279_v25 = vcombine.high %v2202_v18, %v2209_v56 }
 0x252   :  { %v2901_v31 = vrot.slane %v2894_v33, %v3839_v47  ;;  %v2909_v9 = vrot.slane %v3284_v32, %v3839_v47  ;;  %v2917_v28 = vrot.slane %v2910_v55, %v3839_v47  ;;  %v2925_v21 = vrot.slane %v3285_v27, %v3839_v47 }
 0x253   :  { %v2697_v53 = vrot.slane %v2690_v1, %v3839_v47  ;;  %v2705_v52 = vrot.slane %v3278_v45, %v3839_v47  ;;  %v2713_v0 = vrot.slane %v2706_v44, %v3839_v47  ;;  %v2721_v3 = vrot.slane %v3279_v25, %v3839_v47 }
 0x254   :  { %v2926_v5 = vcombine.low %v2901_v31, %v2909_v9  ;;  %v2927_v51 = vcombine.high %v2901_v31, %v2909_v9  ;;  %v2942_v19 = vcombine.low %v2917_v28, %v2925_v21  ;;  %v2943_v35 = vcombine.high %v2917_v28, %v2925_v21 }
 0x255   :  { %v2722_v41 = vcombine.low %v2697_v53, %v2705_v52  ;;  %v2723_v24 = vcombine.high %v2697_v53, %v2705_v52  ;;  %v2738_v57 = vcombine.low %v2713_v0, %v2721_v3  ;;  %v2739_v60 = vcombine.high %v2713_v0, %v2721_v3 }
 0x256   :  { %v2934_v12 = vrot.slane %v2926_v5, %v3845_v11  ;;  %v2941_v8 = vrot.slane %v2927_v51, %v3845_v11  ;;  %v2950_v54 = vrot.slane %v2942_v19, %v3845_v11  ;;  %v2957_v17 = vrot.slane %v2943_v35, %v3845_v11 }
 0x257   :  { %v2730_v37 = vrot.slane %v2722_v41, %v3845_v11  ;;  %v2737_v47 = vrot.slane %v2723_v24, %v3845_v11  ;;  %v2746_v39 = vrot.slane %v2738_v57, %v3845_v11  ;;  %v2753_v42 = vrot.slane %v2739_v60, %v3845_v11 }
 0x258   :  { %v2958_v26 = vcombine.low %v2934_v12, %v2950_v54  ;;  %v2959_v62 = vcombine.high %v2934_v12, %v2950_v54  ;;  %v2960_v59 = vcombine.low %v2941_v8, %v2957_v17  ;;  %v2961_v34 = vcombine.high %v2941_v8, %v2957_v17 }
 0x259   :  { %v2754_v7 = vcombine.low %v2730_v37, %v2746_v39  ;;  %v2755_v2 = vcombine.high %v2730_v37, %v2746_v39  ;;  %v2756_v15 = vcombine.low %v2737_v47, %v2753_v42  ;;  %v2757_v4 = vcombine.high %v2737_v47, %v2753_v42 }
 0x25a   :  { %v3365_v30 = vpack.c.bf16 %v2958_v26, %v2958_v26  ;;  %v3373_v13 = vpack.c.bf16 %v2959_v62, %v2959_v62  ;;  %v3381_v22 = vpack.c.bf16 %v2960_v59, %v2960_v59  ;;  %v3389_v23 = vpack.c.bf16 %v2961_v34, %v2961_v34 }
 0x25b   :  { %v3362_v58 = vpack.c.bf16 %v2754_v7, %v2754_v7  ;;  %v3370_v38 = vpack.c.bf16 %v2755_v2, %v2755_v2  ;;  %v3378_v48 = vpack.c.bf16 %v2756_v15, %v2756_v15  ;;  %v3386_v6 = vpack.c.bf16 %v2757_v4, %v2757_v4 }
 0x25c   :  { %3097 = vst.msk [vmem:[%s4673_s12 + $0x1c] sm:$0xf] %vm1761_vm2, %v3365_v30  ;;  %3105 = vst.msk [vmem:[%s4673_s12 + $0x3c] sm:$0xf] %vm1761_vm2, %v3373_v13 }
 0x25d   :  { %3113 = vst.msk [vmem:[%s4673_s12 + $0x5c] sm:$0xf] %vm1761_vm2, %v3381_v22  ;;  %3121 = vst.msk [vmem:[%s4673_s12 + $0x7c] sm:$0xf] %vm1761_vm2, %v3389_v23 }
 0x25e   :  { %3094 = vst.msk [vmem:[%s4673_s12 + $0x10] sm:$0xf] %vm1761_vm2, %v3362_v58  ;;  %3102 = vst.msk [vmem:[%s4673_s12 + $0x30] sm:$0xf] %vm1761_vm2, %v3370_v38 }
 0x25f   :  { %3110 = vst.msk [vmem:[%s4673_s12 + $0x50] sm:$0xf] %vm1761_vm2, %v3378_v48  ;;  %3118 = vst.msk [vmem:[%s4673_s12 + $0x70] sm:$0xf] %vm1761_vm2, %v3386_v6 }
 0x260   :  { %3487 = dma.done.wait [#allocation3], 256  }
 0x261   :  { %3488 = vsyncadd [#allocation3], 4294967040 }
 0x262   :  { %3190 = vsyncpa [#allocation3], 1 }

</bundles_post_ra>
